<compile_context>
chip_gen: v7x
topology: tpu7x:2x2x1
jax: 0.10.0
libtpu: 0.0.40
codegen_flags: <defaults>
</compile_context>

<pallas_src>
import functools

import jax
import jax.numpy as jnp
from jax.experimental import pallas as pl
from jax.experimental.pallas import tpu as pltpu

_VMEM_LIMIT = 48 * 1024 * 1024


def _layernorm(v, g, b, eps=1e-6):
    # eps=1e-6 matches nn.LayerNorm(dim, eps=1e-06) in the reference module.
    mu = jnp.mean(v, axis=-1, keepdims=True)
    var = jnp.mean((v - mu) ** 2, axis=-1, keepdims=True)   # biased var, like torch
    return (v - mu) * jax.lax.rsqrt(var + eps) * g + b


# ----------------------------- patch-embed kernel -----------------------------

def make_patch_embed_kernel(Nb, T, K, D):
    M = Nb * T

    def kernel(patches_ref, prompt_ref, pos_ref, pe_w_ref, pe_b_ref, tok_ref):
        pf = patches_ref[...].reshape(M, K)                 # bf16, pre-shifted by 1 token
        emb = (jnp.dot(pf, pe_w_ref[...],
                       preferred_element_type=jnp.float32)
               + pe_b_ref[...])                             # (M, D) f32
        emb3 = emb.reshape(Nb, T, D)
        t_idx = jax.lax.broadcasted_iota(jnp.int32, (Nb, T, D), 1)
        prompt_b = jnp.broadcast_to(prompt_ref[...], (Nb, T, D))
        # token 0 of every sample is the prompt; tokens 1..T-1 hold the shifted
        # patch embeddings == cat([prompt, pe(x)], 1)[:, :-1, :]; then + pos.
        tok_ref[...] = jnp.where(t_idx == 0, prompt_b, emb3) + pos_ref[...]

    return kernel


# ----------------------------- transformer kernel -----------------------------

def make_transformer_kernel(Nb, T, D, n_heads):
    hd = D // n_heads
    M = Nb * T
    scale = hd ** (-0.5)
    bf16 = jnp.bfloat16

    def kernel(tok_ref, bias_ref,
               g1_ref, b1_ref, wqkv_ref, bqkv_ref, wproj_ref, bproj_ref,
               g2_ref, b2_ref, w1_ref, bfc1_ref, w2_ref, bfc2_ref,
               ng_ref, nb_ref, o_ref):
        d = pl.program_id(1)
        last = pl.num_programs(1) - 1

        # ---- depth step 0: seed the resident residual stream from the tokens ----
        @pl.when(d == 0)
        def _():
            o_ref[...] = tok_ref[...]

        x = o_ref[...].reshape(M, D)                        # (M, D) f32 residual stream

        # ---- attention branch (pre-norm), per (sample, head) ----
        xn = _layernorm(x, g1_ref[0], b1_ref[0]).astype(bf16)
        qkv = (jnp.dot(xn, wqkv_ref[0], preferred_element_type=jnp.float32)
               + bqkv_ref[0])                               # (M, 3D) f32
        q3 = (qkv[:, 0:D] * scale).reshape(Nb, T, D).astype(bf16)
        k3 = qkv[:, D:2 * D].reshape(Nb, T, D).astype(bf16)
        v3 = qkv[:, 2 * D:3 * D].reshape(Nb, T, D).astype(bf16)
        # regroup into one batched axis of size n_heads*Nb (head-major);
        # static slices + leading-axis concat, no in-kernel 4-D transpose.
        qh = jnp.concatenate([q3[:, :, h * hd:(h + 1) * hd] for h in range(n_heads)], axis=0)
        kh = jnp.concatenate([k3[:, :, h * hd:(h + 1) * hd] for h in range(n_heads)], axis=0)
        vh = jnp.concatenate([v3[:, :, h * hd:(h + 1) * hd] for h in range(n_heads)], axis=0)
        s = jnp.einsum('bqd,bkd->bqk', qh, kh,
                       preferred_element_type=jnp.float32)  # (n_heads*Nb, T, T)
        s = s + bias_ref[...]                               # (T, T) additive mask bias
        s = s - jnp.max(s, axis=-1, keepdims=True)
        e = jnp.exp(s)
        p = e / jnp.sum(e, axis=-1, keepdims=True)          # exact softmax divide
        wa = jnp.einsum('bqk,bkd->bqd', p.astype(bf16), vh,
                        preferred_element_type=jnp.float32)  # (n_heads*Nb, T, hd)
        # reassemble heads -> (Nb, T, D) with head-major columns (== torch
        # transpose(1,2).flatten(2)), then the output projection.
        wa = jnp.concatenate([wa[h * Nb:(h + 1) * Nb] for h in range(n_heads)], axis=-1)
        attn_out = (jnp.dot(wa.reshape(M, D).astype(bf16), wproj_ref[0],
                            preferred_element_type=jnp.float32) + bproj_ref[0])
        x = x + attn_out                                    # residual 1

        # ---- MLP branch (pre-norm) ----
        xn2 = _layernorm(x, g2_ref[0], b2_ref[0]).astype(bf16)
        h1 = (jnp.dot(xn2, w1_ref[0], preferred_element_type=jnp.float32)
              + bfc1_ref[0])
        # exact GELU (nn.GELU default): 0.5*x*(1+erf(x/sqrt(2))) in f32
        h1 = 0.5 * h1 * (1.0 + jax.lax.erf(h1 * 0.7071067811865476))
        h2 = (jnp.dot(h1.astype(bf16), w2_ref[0],
                      preferred_element_type=jnp.float32) + bfc2_ref[0])
        x = x + h2                                          # residual 2

        @pl.when(d < last)
        def _():
            o_ref[...] = x.reshape(Nb, T, D)

        # ---- last depth step: final LayerNorm, in place on the output block ----
        @pl.when(d == last)
        def _():
            y = _layernorm(x, ng_ref[...], nb_ref[...])
            o_ref[...] = y.reshape(Nb, T, D)

    return kernel


# ----------------------------- parameter prep -----------------------------

def prepare_device_params(params):
    """Cast matmul weights to bf16 (f32 accumulation in-kernel); biases stay f32."""
    bf = jnp.bfloat16
    dp = dict(params)
    for name in ("pe_w", "wqkv", "wproj", "w1", "w2"):
        dp[name] = params[name].astype(bf)
    return dp


def _pick_batch_tile(N, cap=8):
    """Largest divisor of N (<= cap) that still leaves >= 2 batch-tile grid
    steps, so the 'parallel' axis can be sharded across TensorCores (v7x)."""
    best = 1
    for nb in range(1, min(N, cap) + 1):
        if N % nb == 0 and N // nb >= 2:
            best = nb
    return best


# ----------------------------- full forward -----------------------------

def vit_decoder_forward(de, prompt, mask_de, params, *, patch_size, n_heads,
                        batch_tile=None):
    """de: (N, C, H, W) NCHW; prompt: (N, 1, D); mask_de: (T, T) (0 == masked)."""
    N, C, H, W = de.shape
    p = patch_size
    Hp, Wp = H // p, W // p
    T = Hp * Wp
    K = C * p * p
    D = params["pe_w"].shape[1]
    depth = params["wqkv"].shape[0]

    Nb = batch_tile or _pick_batch_tile(N)
    assert N % Nb == 0, "batch must divide by the batch tile"
    NBT = N // Nb

    # --- host-side layout glue (fused by XLA into the input feed) ---
    # TODO(synk): the NCHW -> token 6-D transpose has no clean in-kernel
    # equivalent; kept as wrapper glue (done once on the raw input).
    patches = (de.reshape(N, C, Hp, p, Wp, p)
                 .transpose(0, 2, 4, 1, 3, 5)
                 .reshape(N, T, K))
    # pre-shift by one token: row t>=1 holds patch t-1, row 0 is a dummy that
    # the kernel overwrites with the prompt  == cat([prompt, pe(x)], 1)[:, :-1]
    patches = jnp.concatenate(
        [jnp.zeros((N, 1, K), patches.dtype), patches[:, :T - 1, :]], axis=1)
    patches = patches.astype(jnp.bfloat16)

    # (T, T) additive attention-mask bias == masked_fill(mask == 0, -10000)
    bias = jnp.where(mask_de == 0, -10000.0, 0.0).astype(jnp.float32)

    dp = prepare_device_params(params)

    # ---------------- stage 1: patch embed + prompt + pos embed ----------------
    pe_kernel = make_patch_embed_kernel(Nb, T, K, D)
    tokens = pl.pallas_call(
        pe_kernel,
        out_shape=jax.ShapeDtypeStruct((N, T, D), jnp.float32),
        grid=(NBT,),
        in_specs=[
            pl.BlockSpec((Nb, T, K), lambda b: (b, 0, 0)),
            pl.BlockSpec((Nb, 1, D), lambda b: (b, 0, 0)),
            pl.BlockSpec((1, T, D), lambda b: (0, 0, 0)),
            pl.BlockSpec((K, D), lambda b: (0, 0)),
            pl.BlockSpec((1, D), lambda b: (0, 0)),
        ],
        out_specs=pl.BlockSpec((Nb, T, D), lambda b: (b, 0, 0)),
        compiler_params=pltpu.CompilerParams(
            dimension_semantics=("parallel",),
            vmem_limit_bytes=_VMEM_LIMIT),
    )(patches, prompt, dp["pos_embed"], dp["pe_w"], dp["pe_b"])

    # ---------------- stage 2: depth-streamed transformer stack ----------------
    def batch_spec(arr):
        nd = arr.ndim
        return pl.BlockSpec((Nb,) + arr.shape[1:],
                            lambda b, d, _nd=nd: (b,) + (0,) * (_nd - 1))

    def const_spec(arr):
        nd = arr.ndim
        return pl.BlockSpec(arr.shape, lambda b, d, _nd=nd: (0,) * _nd)

    def depth_spec(arr):
        nd = arr.ndim
        return pl.BlockSpec((1,) + arr.shape[1:],
                            lambda b, d, _nd=nd: (d,) + (0,) * (_nd - 1))

    stacked_names = ("g1", "b1", "wqkv", "bqkv", "wproj", "bproj",
                     "g2", "b2", "w1", "bfc1", "w2", "bfc2")
    tf_kernel = make_transformer_kernel(Nb, T, D, n_heads)
    args = ((tokens, bias)
            + tuple(dp[n] for n in stacked_names)
            + (dp["norm_g"], dp["norm_b"]))
    in_specs = ([batch_spec(tokens), const_spec(bias)]
                + [depth_spec(dp[n]) for n in stacked_names]
                + [const_spec(dp["norm_g"]), const_spec(dp["norm_b"])])

    return pl.pallas_call(
        tf_kernel,
        out_shape=jax.ShapeDtypeStruct((N, T, D), jnp.float32),
        grid=(NBT, depth),
        in_specs=in_specs,
        out_specs=pl.BlockSpec((Nb, T, D), lambda b, d: (b, 0, 0)),
        compiler_params=pltpu.CompilerParams(
            dimension_semantics=("parallel", "arbitrary"),
            vmem_limit_bytes=_VMEM_LIMIT),
    )(*args)
    # TODO(synk): self.head (Linear to n_classes) exists in __init__ but is not
    # used by VisionTransformerDecoder.forward, so it is intentionally omitted.
    # TODO(synk): all Dropout layers are identity in eval / p=0 and are omitted.


# ----------------------------- deterministic params -----------------------------

def init_params(key, *, img_size, patch_size, in_chans, embed_dim,
                depth, n_heads, mlp_ratio):
    T = (img_size // patch_size) ** 2
    K = in_chans * patch_size * patch_size
    hidden = int(embed_dim * mlp_ratio)
    D = embed_dim
    ks = jax.random.split(key, 6)

    def w(k, shape):
        return (0.02 * jax.random.normal(k, shape)).astype(jnp.float32)

    return {
        "pe_w": w(ks[0], (K, D)),                 # Conv2d(k=s=p) as (K, D) matmul
        "pe_b": jnp.zeros((1, D), jnp.float32),
        "pos_embed": w(ks[1], (1, T, D)),
        "norm_g": jnp.ones((1, D), jnp.float32),
        "norm_b": jnp.zeros((1, D), jnp.float32),
        # per-block params stacked on a leading depth axis, weights stored (in, out)
        "g1": jnp.ones((depth, 1, D), jnp.float32),
        "b1": jnp.zeros((depth, 1, D), jnp.float32),
        "wqkv": w(ks[2], (depth, D, 3 * D)),
        "bqkv": jnp.zeros((depth, 1, 3 * D), jnp.float32),
        "wproj": w(ks[3], (depth, D, D)),
        "bproj": jnp.zeros((depth, 1, D), jnp.float32),
        "g2": jnp.ones((depth, 1, D), jnp.float32),
        "b2": jnp.zeros((depth, 1, D), jnp.float32),
        "w1": w(ks[4], (depth, D, hidden)),
        "bfc1": jnp.zeros((depth, 1, hidden), jnp.float32),
        "w2": w(ks[5], (depth, hidden, D)),
        "bfc2": jnp.zeros((depth, 1, D), jnp.float32),
    }


# ----------------------------- main -----------------------------

if __name__ == "__main__":
    cfg = dict(img_size=16, patch_size=4, in_chans=3, embed_dim=32,
               depth=2, n_heads=4, mlp_ratio=4.0)
    T = (cfg["img_size"] // cfg["patch_size"]) ** 2   # 16 tokens
    N = 2

    key = jax.random.PRNGKey(0)
    k_de, k_prompt, k_params = jax.random.split(key, 3)

    de = jax.random.normal(
        k_de, (N, cfg["in_chans"], cfg["img_size"], cfg["img_size"]),
        dtype=jnp.float32)
    prompt = jax.random.normal(k_prompt, (N, 1, cfg["embed_dim"]),
                               dtype=jnp.float32)
    # causal mask, broadcast over batch and heads (masked positions == 0)
    mask_de = jnp.tril(jnp.ones((T, T), dtype=jnp.float32))

    params = init_params(k_params, **cfg)

    fwd = jax.jit(functools.partial(vit_decoder_forward,
                                    patch_size=cfg["patch_size"],
                                    n_heads=cfg["n_heads"]))
    out = jax.block_until_ready(fwd(de, prompt, mask_de, params))

    assert out.shape == (N, T, cfg["embed_dim"])
    assert bool(jnp.all(jnp.isfinite(out)))
    print("KERNEL_OK")
</pallas_src>

<mosaic_0001>
module attributes {stable_mosaic.version = 11 : i64} {
  func.func @kernel(%arg0: i32, %arg1: memref<1x16x48xbf16, #tpu.memory_space<vmem>>, %arg2: memref<1x1x32xf32, #tpu.memory_space<vmem>>, %arg3: memref<1x16x32xf32, #tpu.memory_space<vmem>>, %arg4: memref<48x32xbf16, #tpu.memory_space<vmem>>, %arg5: memref<1x32xf32, #tpu.memory_space<vmem>>, %arg6: memref<1x16x32xf32, #tpu.memory_space<vmem>>) attributes {dimension_semantics = [#tpu.dimension_semantics<parallel>], iteration_bounds = array<i64: 2>, scalar_prefetch = 0 : i64, scratch_operands = 0 : i64, tpu.core_type = #tpu.core_type<tc>, window_params = [{transform_indices = @transform_0, window_bounds = array<i64: 1, 16, 48>}, {transform_indices = @transform_1, window_bounds = array<i64: 1, 1, 32>}, {pipeline_mode = #tpu.pipeline_mode<synchronous>, transform_indices = @transform_2, window_bounds = array<i64: 1, 16, 32>}, {pipeline_mode = #tpu.pipeline_mode<synchronous>, transform_indices = @transform_3, window_bounds = array<i64: 48, 32>}, {pipeline_mode = #tpu.pipeline_mode<synchronous>, transform_indices = @transform_4, window_bounds = array<i64: 1, 32>}, {transform_indices = @transform_5, window_bounds = array<i64: 1, 16, 32>}]} {
    %c0 = arith.constant 0 : index
    %c0_0 = arith.constant 0 : index
    %c0_1 = arith.constant 0 : index
    %0 = vector.load %arg1[%c0, %c0_0, %c0_1] : memref<1x16x48xbf16, #tpu.memory_space<vmem>>, vector<1x16x48xbf16>
    %1 = vector.shape_cast %0 : vector<1x16x48xbf16> to vector<16x48xbf16>
    %c0_2 = arith.constant 0 : index
    %c0_3 = arith.constant 0 : index
    %2 = vector.load %arg4[%c0_2, %c0_3] : memref<48x32xbf16, #tpu.memory_space<vmem>>, vector<48x32xbf16>
    %cst = arith.constant dense<0.000000e+00> : vector<16x32xf32>
    %3 = tpu.matmul %1, %2, %cst {dimension_numbers = #tpu.dot_dimension_numbers<[1], [0], [0], [1], [0, 0, 1, 1], [], []>} : vector<16x48xbf16>, vector<48x32xbf16>, vector<16x32xf32> -> vector<16x32xf32>
    %c0_4 = arith.constant 0 : index
    %c0_5 = arith.constant 0 : index
    %4 = vector.load %arg5[%c0_4, %c0_5] : memref<1x32xf32, #tpu.memory_space<vmem>>, vector<1x32xf32>
    %5 = vector.broadcast %4 : vector<1x32xf32> to vector<16x32xf32>
    %6 = arith.addf %3, %5 : vector<16x32xf32>
    %7 = vector.shape_cast %6 : vector<16x32xf32> to vector<1x16x32xf32>
    %8 = tpu.iota {dimensions = array<i32: 1>} : vector<1x16x32xi32>
    %c0_6 = arith.constant 0 : index
    %c0_7 = arith.constant 0 : index
    %c0_8 = arith.constant 0 : index
    %9 = vector.load %arg2[%c0_6, %c0_7, %c0_8] : memref<1x1x32xf32, #tpu.memory_space<vmem>>, vector<1x1x32xf32>
    %10 = vector.shape_cast %9 : vector<1x1x32xf32> to vector<1x1x32xf32>
    %11 = vector.broadcast %10 : vector<1x1x32xf32> to vector<1x16x32xf32>
    %c0_i32 = arith.constant 0 : i32
    %12 = vector.broadcast %c0_i32 : i32 to vector<1x16x32xi32>
    %13 = arith.cmpi eq, %8, %12 : vector<1x16x32xi32>
    %14 = arith.select %13, %11, %7 : vector<1x16x32xi1>, vector<1x16x32xf32>
    %c0_9 = arith.constant 0 : index
    %c0_10 = arith.constant 0 : index
    %c0_11 = arith.constant 0 : index
    %15 = vector.load %arg3[%c0_9, %c0_10, %c0_11] : memref<1x16x32xf32, #tpu.memory_space<vmem>>, vector<1x16x32xf32>
    %16 = arith.addf %14, %15 : vector<1x16x32xf32>
    %c0_12 = arith.constant 0 : index
    %c0_13 = arith.constant 0 : index
    %c0_14 = arith.constant 0 : index
    %17 = vector.load %arg6[%c0_12, %c0_13, %c0_14] : memref<1x16x32xf32, #tpu.memory_space<vmem>>, vector<1x16x32xf32>
    tpu.vector_store %arg6[%c0_12, %c0_13, %c0_14], %16 {strides = array<i32>} : memref<1x16x32xf32, #tpu.memory_space<vmem>>, vector<1x16x32xf32>,
    return
  }
  func.func @transform_0(%arg0: i32) -> (i32, i32, i32) {
    %c0_i32 = arith.constant 0 : i32
    %c0_i32_0 = arith.constant 0 : i32
    %c0_i32_1 = arith.constant 0 : i32
    return %arg0, %c0_i32, %c0_i32_0 : i32, i32, i32
  }
  func.func @transform_1(%arg0: i32) -> (i32, i32, i32) {
    %c0_i32 = arith.constant 0 : i32
    %c0_i32_0 = arith.constant 0 : i32
    %c0_i32_1 = arith.constant 0 : i32
    return %arg0, %c0_i32, %c0_i32_0 : i32, i32, i32
  }
  func.func @transform_2(%arg0: i32) -> (i32, i32, i32) {
    %c0_i32 = arith.constant 0 : i32
    %c0_i32_0 = arith.constant 0 : i32
    %c0_i32_1 = arith.constant 0 : i32
    %c0_i32_2 = arith.constant 0 : i32
    return %c0_i32, %c0_i32_0, %c0_i32_1 : i32, i32, i32
  }
  func.func @transform_3(%arg0: i32) -> (i32, i32) {
    %c0_i32 = arith.constant 0 : i32
    %c0_i32_0 = arith.constant 0 : i32
    %c0_i32_1 = arith.constant 0 : i32
    return %c0_i32, %c0_i32_0 : i32, i32
  }
  func.func @transform_4(%arg0: i32) -> (i32, i32) {
    %c0_i32 = arith.constant 0 : i32
    %c0_i32_0 = arith.constant 0 : i32
    %c0_i32_1 = arith.constant 0 : i32
    return %c0_i32, %c0_i32_0 : i32, i32
  }
  func.func @transform_5(%arg0: i32) -> (i32, i32, i32) {
    %c0_i32 = arith.constant 0 : i32
    %c0_i32_0 = arith.constant 0 : i32
    %c0_i32_1 = arith.constant 0 : i32
    return %arg0, %c0_i32, %c0_i32_0 : i32, i32, i32
  }
}

module attributes {stable_mosaic.version = 11 : i64} {
  func.func @kernel(%arg0: i32, %arg1: i32, %arg2: memref<1x16x32xf32, #tpu.memory_space<vmem>>, %arg3: memref<16x16xf32, #tpu.memory_space<vmem>>, %arg4: memref<1x1x32xf32, #tpu.memory_space<vmem>>, %arg5: memref<1x1x32xf32, #tpu.memory_space<vmem>>, %arg6: memref<1x32x96xbf16, #tpu.memory_space<vmem>>, %arg7: memref<1x1x96xf32, #tpu.memory_space<vmem>>, %arg8: memref<1x32x32xbf16, #tpu.memory_space<vmem>>, %arg9: memref<1x1x32xf32, #tpu.memory_space<vmem>>, %arg10: memref<1x1x32xf32, #tpu.memory_space<vmem>>, %arg11: memref<1x1x32xf32, #tpu.memory_space<vmem>>, %arg12: memref<1x32x128xbf16, #tpu.memory_space<vmem>>, %arg13: memref<1x1x128xf32, #tpu.memory_space<vmem>>, %arg14: memref<1x128x32xbf16, #tpu.memory_space<vmem>>, %arg15: memref<1x1x32xf32, #tpu.memory_space<vmem>>, %arg16: memref<1x32xf32, #tpu.memory_space<vmem>>, %arg17: memref<1x32xf32, #tpu.memory_space<vmem>>, %arg18: memref<1x16x32xf32, #tpu.memory_space<vmem>>) attributes {dimension_semantics = [#tpu.dimension_semantics<parallel>, #tpu.dimension_semantics<arbitrary>], iteration_bounds = array<i64: 2, 2>, scalar_prefetch = 0 : i64, scratch_operands = 0 : i64, tpu.core_type = #tpu.core_type<tc>, window_params = [{transform_indices = @transform_0, window_bounds = array<i64: 1, 16, 32>}, {pipeline_mode = #tpu.pipeline_mode<synchronous>, transform_indices = @transform_1, window_bounds = array<i64: 16, 16>}, {transform_indices = @transform_2, window_bounds = array<i64: 1, 1, 32>}, {transform_indices = @transform_3, window_bounds = array<i64: 1, 1, 32>}, {transform_indices = @transform_4, window_bounds = array<i64: 1, 32, 96>}, {transform_indices = @transform_5, window_bounds = array<i64: 1, 1, 96>}, {transform_indices = @transform_6, window_bounds = array<i64: 1, 32, 32>}, {transform_indices = @transform_7, window_bounds = array<i64: 1, 1, 32>}, {transform_indices = @transform_8, window_bounds = array<i64: 1, 1, 32>}, {transform_indices = @transform_9, window_bounds = array<i64: 1, 1, 32>}, {transform_indices = @transform_10, window_bounds = array<i64: 1, 32, 128>}, {transform_indices = @transform_11, window_bounds = array<i64: 1, 1, 128>}, {transform_indices = @transform_12, window_bounds = array<i64: 1, 128, 32>}, {transform_indices = @transform_13, window_bounds = array<i64: 1, 1, 32>}, {pipeline_mode = #tpu.pipeline_mode<synchronous>, transform_indices = @transform_14, window_bounds = array<i64: 1, 32>}, {pipeline_mode = #tpu.pipeline_mode<synchronous>, transform_indices = @transform_15, window_bounds = array<i64: 1, 32>}, {transform_indices = @transform_16, window_bounds = array<i64: 1, 16, 32>}]} {
    %c0_i32 = arith.constant 0 : i32
    %0 = arith.cmpi eq, %arg1, %c0_i32 : i32
    %1 = arith.extui %0 : i1 to i32
    %c0_i32_0 = arith.constant 0 : i32
    %2 = arith.cmpi ne, %1, %c0_i32_0 : i32
    scf.if %2 {
      %c0_65 = arith.constant 0 : index
      %c0_66 = arith.constant 0 : index
      %c0_67 = arith.constant 0 : index
      %153 = vector.load %arg2[%c0_65, %c0_66, %c0_67] : memref<1x16x32xf32, #tpu.memory_space<vmem>>, vector<1x16x32xf32>
      %c0_68 = arith.constant 0 : index
      %c0_69 = arith.constant 0 : index
      %c0_70 = arith.constant 0 : index
      %154 = vector.load %arg18[%c0_68, %c0_69, %c0_70] : memref<1x16x32xf32, #tpu.memory_space<vmem>>, vector<1x16x32xf32>
      tpu.vector_store %arg18[%c0_68, %c0_69, %c0_70], %153 {strides = array<i32>} : memref<1x16x32xf32, #tpu.memory_space<vmem>>, vector<1x16x32xf32>,
    } else {
    }
    %c0 = arith.constant 0 : index
    %c0_1 = arith.constant 0 : index
    %c0_2 = arith.constant 0 : index
    %3 = vector.load %arg18[%c0, %c0_1, %c0_2] : memref<1x16x32xf32, #tpu.memory_space<vmem>>, vector<1x16x32xf32>
    %4 = vector.shape_cast %3 : vector<1x16x32xf32> to vector<16x32xf32>
    %c0_3 = arith.constant 0 : index
    %c0_4 = arith.constant 0 : index
    %c0_5 = arith.constant 0 : index
    %5 = vector.load %arg4[%c0_3, %c0_4, %c0_5] : memref<1x1x32xf32, #tpu.memory_space<vmem>>, vector<1x1x32xf32>
    %6 = vector.shape_cast %5 : vector<1x1x32xf32> to vector<1x32xf32>
    %c0_6 = arith.constant 0 : index
    %c0_7 = arith.constant 0 : index
    %c0_8 = arith.constant 0 : index
    %7 = vector.load %arg5[%c0_6, %c0_7, %c0_8] : memref<1x1x32xf32, #tpu.memory_space<vmem>>, vector<1x1x32xf32>
    %8 = vector.shape_cast %7 : vector<1x1x32xf32> to vector<1x32xf32>
    %cst = arith.constant dense<0.000000e+00> : vector<16xf32>
    %9 = vector.multi_reduction <add>, %4, %cst [1] : vector<16x32xf32> to vector<16xf32>
    %10 = vector.shape_cast %9 : vector<16xf32> to vector<16x1xf32>
    %cst_9 = arith.constant 3.200000e+01 : f32
    %11 = vector.broadcast %cst_9 : f32 to vector<16x1xf32>
    %12 = arith.divf %10, %11 : vector<16x1xf32>
    %13 = vector.broadcast %12 : vector<16x1xf32> to vector<16x32xf32>
    %14 = arith.subf %4, %13 : vector<16x32xf32>
    %15 = arith.mulf %14, %14 : vector<16x32xf32>
    %cst_10 = arith.constant dense<0.000000e+00> : vector<16xf32>
    %16 = vector.multi_reduction <add>, %15, %cst_10 [1] : vector<16x32xf32> to vector<16xf32>
    %17 = vector.shape_cast %16 : vector<16xf32> to vector<16x1xf32>
    %cst_11 = arith.constant 3.200000e+01 : f32
    %18 = vector.broadcast %cst_11 : f32 to vector<16x1xf32>
    %19 = arith.divf %17, %18 : vector<16x1xf32>
    %20 = vector.broadcast %12 : vector<16x1xf32> to vector<16x32xf32>
    %21 = arith.subf %4, %20 : vector<16x32xf32>
    %cst_12 = arith.constant 9.99999997E-7 : f32
    %22 = vector.broadcast %cst_12 : f32 to vector<16x1xf32>
    %23 = arith.addf %19, %22 : vector<16x1xf32>
    %24 = math.rsqrt %23 : vector<16x1xf32>
    %25 = vector.broadcast %24 : vector<16x1xf32> to vector<16x32xf32>
    %26 = arith.mulf %21, %25 : vector<16x32xf32>
    %27 = vector.broadcast %6 : vector<1x32xf32> to vector<16x32xf32>
    %28 = arith.mulf %26, %27 : vector<16x32xf32>
    %29 = vector.broadcast %8 : vector<1x32xf32> to vector<16x32xf32>
    %30 = arith.addf %28, %29 : vector<16x32xf32>
    %31 = arith.truncf %30 : vector<16x32xf32> to vector<16x32xbf16>
    %c0_13 = arith.constant 0 : index
    %c0_14 = arith.constant 0 : index
    %c0_15 = arith.constant 0 : index
    %32 = vector.load %arg6[%c0_13, %c0_14, %c0_15] : memref<1x32x96xbf16, #tpu.memory_space<vmem>>, vector<1x32x96xbf16>
    %33 = vector.shape_cast %32 : vector<1x32x96xbf16> to vector<32x96xbf16>
    %cst_16 = arith.constant dense<0.000000e+00> : vector<16x96xf32>
    %34 = tpu.matmul %31, %33, %cst_16 {dimension_numbers = #tpu.dot_dimension_numbers<[1], [0], [0], [1], [0, 0, 1, 1], [], []>} : vector<16x32xbf16>, vector<32x96xbf16>, vector<16x96xf32> -> vector<16x96xf32>
    %c0_17 = arith.constant 0 : index
    %c0_18 = arith.constant 0 : index
    %c0_19 = arith.constant 0 : index
    %35 = vector.load %arg7[%c0_17, %c0_18, %c0_19] : memref<1x1x96xf32, #tpu.memory_space<vmem>>, vector<1x1x96xf32>
    %36 = vector.shape_cast %35 : vector<1x1x96xf32> to vector<1x96xf32>
    %37 = vector.broadcast %36 : vector<1x96xf32> to vector<16x96xf32>
    %38 = arith.addf %34, %37 : vector<16x96xf32>
    %39 = vector.extract_strided_slice %38 {offsets = [0, 0], sizes = [16, 32], strides = [1, 1]} : vector<16x96xf32> to vector<16x32xf32>
    %cst_20 = arith.constant 0.353553385 : f32
    %40 = vector.broadcast %cst_20 : f32 to vector<16x32xf32>
    %41 = arith.mulf %39, %40 : vector<16x32xf32>
    %42 = vector.shape_cast %41 : vector<16x32xf32> to vector<1x16x32xf32>
    %43 = arith.truncf %42 : vector<1x16x32xf32> to vector<1x16x32xbf16>
    %44 = vector.extract_strided_slice %38 {offsets = [0, 32], sizes = [16, 32], strides = [1, 1]} : vector<16x96xf32> to vector<16x32xf32>
    %45 = vector.shape_cast %44 : vector<16x32xf32> to vector<1x16x32xf32>
    %46 = arith.truncf %45 : vector<1x16x32xf32> to vector<1x16x32xbf16>
    %47 = vector.extract_strided_slice %38 {offsets = [0, 64], sizes = [16, 32], strides = [1, 1]} : vector<16x96xf32> to vector<16x32xf32>
    %48 = vector.shape_cast %47 : vector<16x32xf32> to vector<1x16x32xf32>
    %49 = arith.truncf %48 : vector<1x16x32xf32> to vector<1x16x32xbf16>
    %50 = vector.extract_strided_slice %43 {offsets = [0, 0, 0], sizes = [1, 16, 8], strides = [1, 1, 1]} : vector<1x16x32xbf16> to vector<1x16x8xbf16>
    %51 = vector.extract_strided_slice %43 {offsets = [0, 0, 8], sizes = [1, 16, 8], strides = [1, 1, 1]} : vector<1x16x32xbf16> to vector<1x16x8xbf16>
    %52 = vector.extract_strided_slice %43 {offsets = [0, 0, 16], sizes = [1, 16, 8], strides = [1, 1, 1]} : vector<1x16x32xbf16> to vector<1x16x8xbf16>
    %53 = vector.extract_strided_slice %43 {offsets = [0, 0, 24], sizes = [1, 16, 8], strides = [1, 1, 1]} : vector<1x16x32xbf16> to vector<1x16x8xbf16>
    %54 = tpu.concatenate %50, %51, %52, %53 in 0 : vector<1x16x8xbf16>, vector<1x16x8xbf16>, vector<1x16x8xbf16>, vector<1x16x8xbf16> -> vector<4x16x8xbf16>
    %55 = vector.extract_strided_slice %46 {offsets = [0, 0, 0], sizes = [1, 16, 8], strides = [1, 1, 1]} : vector<1x16x32xbf16> to vector<1x16x8xbf16>
    %56 = vector.extract_strided_slice %46 {offsets = [0, 0, 8], sizes = [1, 16, 8], strides = [1, 1, 1]} : vector<1x16x32xbf16> to vector<1x16x8xbf16>
    %57 = vector.extract_strided_slice %46 {offsets = [0, 0, 16], sizes = [1, 16, 8], strides = [1, 1, 1]} : vector<1x16x32xbf16> to vector<1x16x8xbf16>
    %58 = vector.extract_strided_slice %46 {offsets = [0, 0, 24], sizes = [1, 16, 8], strides = [1, 1, 1]} : vector<1x16x32xbf16> to vector<1x16x8xbf16>
    %59 = tpu.concatenate %55, %56, %57, %58 in 0 : vector<1x16x8xbf16>, vector<1x16x8xbf16>, vector<1x16x8xbf16>, vector<1x16x8xbf16> -> vector<4x16x8xbf16>
    %60 = vector.extract_strided_slice %49 {offsets = [0, 0, 0], sizes = [1, 16, 8], strides = [1, 1, 1]} : vector<1x16x32xbf16> to vector<1x16x8xbf16>
    %61 = vector.extract_strided_slice %49 {offsets = [0, 0, 8], sizes = [1, 16, 8], strides = [1, 1, 1]} : vector<1x16x32xbf16> to vector<1x16x8xbf16>
    %62 = vector.extract_strided_slice %49 {offsets = [0, 0, 16], sizes = [1, 16, 8], strides = [1, 1, 1]} : vector<1x16x32xbf16> to vector<1x16x8xbf16>
    %63 = vector.extract_strided_slice %49 {offsets = [0, 0, 24], sizes = [1, 16, 8], strides = [1, 1, 1]} : vector<1x16x32xbf16> to vector<1x16x8xbf16>
    %64 = tpu.concatenate %60, %61, %62, %63 in 0 : vector<1x16x8xbf16>, vector<1x16x8xbf16>, vector<1x16x8xbf16>, vector<1x16x8xbf16> -> vector<4x16x8xbf16>
    "tpu.trace_start"() <{level = 10 : i32, message = "bqd,bkd->bqk"}> : () -> ()
    %cst_21 = arith.constant dense<0.000000e+00> : vector<4x16x16xf32>
    %65 = tpu.matmul %54, %59, %cst_21 {dimension_numbers = #tpu.dot_dimension_numbers<[2], [2], [1], [1], [0, 0, 0, 1, 1, 1], [0], [0]>} : vector<4x16x8xbf16>, vector<4x16x8xbf16>, vector<4x16x16xf32> -> vector<4x16x16xf32>
    "tpu.trace_stop"() : () -> ()
    %c0_22 = arith.constant 0 : index
    %c0_23 = arith.constant 0 : index
    %66 = vector.load %arg3[%c0_22, %c0_23] : memref<16x16xf32, #tpu.memory_space<vmem>>, vector<16x16xf32>
    %67 = vector.shape_cast %66 : vector<16x16xf32> to vector<1x16x16xf32>
    %68 = vector.broadcast %67 : vector<1x16x16xf32> to vector<4x16x16xf32>
    %69 = arith.addf %65, %68 : vector<4x16x16xf32>
    %cst_24 = arith.constant dense<0xFF800000> : vector<4x16xf32>
    %70 = vector.multi_reduction <maximumf>, %69, %cst_24 [2] : vector<4x16x16xf32> to vector<4x16xf32>
    %71 = vector.shape_cast %70 : vector<4x16xf32> to vector<4x16x1xf32>
    %72 = vector.broadcast %71 : vector<4x16x1xf32> to vector<4x16x16xf32>
    %73 = arith.subf %69, %72 : vector<4x16x16xf32>
    %74 = math.exp %73 : vector<4x16x16xf32>
    %cst_25 = arith.constant dense<0.000000e+00> : vector<4x16xf32>
    %75 = vector.multi_reduction <add>, %74, %cst_25 [2] : vector<4x16x16xf32> to vector<4x16xf32>
    %76 = vector.shape_cast %75 : vector<4x16xf32> to vector<4x16x1xf32>
    %77 = vector.broadcast %76 : vector<4x16x1xf32> to vector<4x16x16xf32>
    %78 = arith.divf %74, %77 : vector<4x16x16xf32>
    %79 = arith.truncf %78 : vector<4x16x16xf32> to vector<4x16x16xbf16>
    "tpu.trace_start"() <{level = 10 : i32, message = "bqk,bkd->bqd"}> : () -> ()
    %cst_26 = arith.constant dense<0.000000e+00> : vector<4x16x8xf32>
    %80 = tpu.matmul %79, %64, %cst_26 {dimension_numbers = #tpu.dot_dimension_numbers<[2], [1], [1], [2], [0, 0, 0, 1, 1, 2], [0], [0]>} : vector<4x16x16xbf16>, vector<4x16x8xbf16>, vector<4x16x8xf32> -> vector<4x16x8xf32>
    "tpu.trace_stop"() : () -> ()
    %81 = vector.extract_strided_slice %80 {offsets = [0, 0, 0], sizes = [1, 16, 8], strides = [1, 1, 1]} : vector<4x16x8xf32> to vector<1x16x8xf32>
    %82 = vector.extract_strided_slice %80 {offsets = [1, 0, 0], sizes = [1, 16, 8], strides = [1, 1, 1]} : vector<4x16x8xf32> to vector<1x16x8xf32>
    %83 = vector.extract_strided_slice %80 {offsets = [2, 0, 0], sizes = [1, 16, 8], strides = [1, 1, 1]} : vector<4x16x8xf32> to vector<1x16x8xf32>
    %84 = vector.extract_strided_slice %80 {offsets = [3, 0, 0], sizes = [1, 16, 8], strides = [1, 1, 1]} : vector<4x16x8xf32> to vector<1x16x8xf32>
    %85 = tpu.concatenate %81, %82, %83, %84 in 2 : vector<1x16x8xf32>, vector<1x16x8xf32>, vector<1x16x8xf32>, vector<1x16x8xf32> -> vector<1x16x32xf32>
    %86 = vector.shape_cast %85 : vector<1x16x32xf32> to vector<16x32xf32>
    %87 = arith.truncf %86 : vector<16x32xf32> to vector<16x32xbf16>
    %c0_27 = arith.constant 0 : index
    %c0_28 = arith.constant 0 : index
    %c0_29 = arith.constant 0 : index
    %88 = vector.load %arg8[%c0_27, %c0_28, %c0_29] : memref<1x32x32xbf16, #tpu.memory_space<vmem>>, vector<1x32x32xbf16>
    %89 = vector.shape_cast %88 : vector<1x32x32xbf16> to vector<32x32xbf16>
    %cst_30 = arith.constant dense<0.000000e+00> : vector<16x32xf32>
    %90 = tpu.matmul %87, %89, %cst_30 {dimension_numbers = #tpu.dot_dimension_numbers<[1], [0], [0], [1], [0, 0, 1, 1], [], []>} : vector<16x32xbf16>, vector<32x32xbf16>, vector<16x32xf32> -> vector<16x32xf32>
    %c0_31 = arith.constant 0 : index
    %c0_32 = arith.constant 0 : index
    %c0_33 = arith.constant 0 : index
    %91 = vector.load %arg9[%c0_31, %c0_32, %c0_33] : memref<1x1x32xf32, #tpu.memory_space<vmem>>, vector<1x1x32xf32>
    %92 = vector.shape_cast %91 : vector<1x1x32xf32> to vector<1x32xf32>
    %93 = vector.broadcast %92 : vector<1x32xf32> to vector<16x32xf32>
    %94 = arith.addf %90, %93 : vector<16x32xf32>
    %95 = arith.addf %4, %94 : vector<16x32xf32>
    %c0_34 = arith.constant 0 : index
    %c0_35 = arith.constant 0 : index
    %c0_36 = arith.constant 0 : index
    %96 = vector.load %arg10[%c0_34, %c0_35, %c0_36] : memref<1x1x32xf32, #tpu.memory_space<vmem>>, vector<1x1x32xf32>
    %97 = vector.shape_cast %96 : vector<1x1x32xf32> to vector<1x32xf32>
    %c0_37 = arith.constant 0 : index
    %c0_38 = arith.constant 0 : index
    %c0_39 = arith.constant 0 : index
    %98 = vector.load %arg11[%c0_37, %c0_38, %c0_39] : memref<1x1x32xf32, #tpu.memory_space<vmem>>, vector<1x1x32xf32>
    %99 = vector.shape_cast %98 : vector<1x1x32xf32> to vector<1x32xf32>
    %cst_40 = arith.constant dense<0.000000e+00> : vector<16xf32>
    %100 = vector.multi_reduction <add>, %95, %cst_40 [1] : vector<16x32xf32> to vector<16xf32>
    %101 = vector.shape_cast %100 : vector<16xf32> to vector<16x1xf32>
    %cst_41 = arith.constant 3.200000e+01 : f32
    %102 = vector.broadcast %cst_41 : f32 to vector<16x1xf32>
    %103 = arith.divf %101, %102 : vector<16x1xf32>
    %104 = vector.broadcast %103 : vector<16x1xf32> to vector<16x32xf32>
    %105 = arith.subf %95, %104 : vector<16x32xf32>
    %106 = arith.mulf %105, %105 : vector<16x32xf32>
    %cst_42 = arith.constant dense<0.000000e+00> : vector<16xf32>
    %107 = vector.multi_reduction <add>, %106, %cst_42 [1] : vector<16x32xf32> to vector<16xf32>
    %108 = vector.shape_cast %107 : vector<16xf32> to vector<16x1xf32>
    %cst_43 = arith.constant 3.200000e+01 : f32
    %109 = vector.broadcast %cst_43 : f32 to vector<16x1xf32>
    %110 = arith.divf %108, %109 : vector<16x1xf32>
    %111 = vector.broadcast %103 : vector<16x1xf32> to vector<16x32xf32>
    %112 = arith.subf %95, %111 : vector<16x32xf32>
    %cst_44 = arith.constant 9.99999997E-7 : f32
    %113 = vector.broadcast %cst_44 : f32 to vector<16x1xf32>
    %114 = arith.addf %110, %113 : vector<16x1xf32>
    %115 = math.rsqrt %114 : vector<16x1xf32>
    %116 = vector.broadcast %115 : vector<16x1xf32> to vector<16x32xf32>
    %117 = arith.mulf %112, %116 : vector<16x32xf32>
    %118 = vector.broadcast %97 : vector<1x32xf32> to vector<16x32xf32>
    %119 = arith.mulf %117, %118 : vector<16x32xf32>
    %120 = vector.broadcast %99 : vector<1x32xf32> to vector<16x32xf32>
    %121 = arith.addf %119, %120 : vector<16x32xf32>
    %122 = arith.truncf %121 : vector<16x32xf32> to vector<16x32xbf16>
    %c0_45 = arith.constant 0 : index
    %c0_46 = arith.constant 0 : index
    %c0_47 = arith.constant 0 : index
    %123 = vector.load %arg12[%c0_45, %c0_46, %c0_47] : memref<1x32x128xbf16, #tpu.memory_space<vmem>>, vector<1x32x128xbf16>
    %124 = vector.shape_cast %123 : vector<1x32x128xbf16> to vector<32x128xbf16>
    %cst_48 = arith.constant dense<0.000000e+00> : vector<16x128xf32>
    %125 = tpu.matmul %122, %124, %cst_48 {dimension_numbers = #tpu.dot_dimension_numbers<[1], [0], [0], [1], [0, 0, 1, 1], [], []>} : vector<16x32xbf16>, vector<32x128xbf16>, vector<16x128xf32> -> vector<16x128xf32>
    %c0_49 = arith.constant 0 : index
    %c0_50 = arith.constant 0 : index
    %c0_51 = arith.constant 0 : index
    %126 = vector.load %arg13[%c0_49, %c0_50, %c0_51] : memref<1x1x128xf32, #tpu.memory_space<vmem>>, vector<1x1x128xf32>
    %127 = vector.shape_cast %126 : vector<1x1x128xf32> to vector<1x128xf32>
    %128 = vector.broadcast %127 : vector<1x128xf32> to vector<16x128xf32>
    %129 = arith.addf %125, %128 : vector<16x128xf32>
    %cst_52 = arith.constant 5.000000e-01 : f32
    %130 = vector.broadcast %cst_52 : f32 to vector<16x128xf32>
    %131 = arith.mulf %130, %129 : vector<16x128xf32>
    %cst_53 = arith.constant 0.707106769 : f32
    %132 = vector.broadcast %cst_53 : f32 to vector<16x128xf32>
    %133 = arith.mulf %129, %132 : vector<16x128xf32>
    %134 = math.erf %133 : vector<16x128xf32>
    %cst_54 = arith.constant 1.000000e+00 : f32
    %135 = vector.broadcast %cst_54 : f32 to vector<16x128xf32>
    %136 = arith.addf %135, %134 : vector<16x128xf32>
    %137 = arith.mulf %131, %136 : vector<16x128xf32>
    %138 = arith.truncf %137 : vector<16x128xf32> to vector<16x128xbf16>
    %c0_55 = arith.constant 0 : index
    %c0_56 = arith.constant 0 : index
    %c0_57 = arith.constant 0 : index
    %139 = vector.load %arg14[%c0_55, %c0_56, %c0_57] : memref<1x128x32xbf16, #tpu.memory_space<vmem>>, vector<1x128x32xbf16>
    %140 = vector.shape_cast %139 : vector<1x128x32xbf16> to vector<128x32xbf16>
    %cst_58 = arith.constant dense<0.000000e+00> : vector<16x32xf32>
    %141 = tpu.matmul %138, %140, %cst_58 {dimension_numbers = #tpu.dot_dimension_numbers<[1], [0], [0], [1], [0, 0, 1, 1], [], []>} : vector<16x128xbf16>, vector<128x32xbf16>, vector<16x32xf32> -> vector<16x32xf32>
    %c0_59 = arith.constant 0 : index
    %c0_60 = arith.constant 0 : index
    %c0_61 = arith.constant 0 : index
    %142 = vector.load %arg15[%c0_59, %c0_60, %c0_61] : memref<1x1x32xf32, #tpu.memory_space<vmem>>, vector<1x1x32xf32>
    %143 = vector.shape_cast %142 : vector<1x1x32xf32> to vector<1x32xf32>
    %144 = vector.broadcast %143 : vector<1x32xf32> to vector<16x32xf32>
    %145 = arith.addf %141, %144 : vector<16x32xf32>
    %146 = arith.addf %95, %145 : vector<16x32xf32>
    %c1_i32 = arith.constant 1 : i32
    %147 = arith.cmpi slt, %arg1, %c1_i32 : i32
    %148 = arith.extui %147 : i1 to i32
    %c0_i32_62 = arith.constant 0 : i32
    %149 = arith.cmpi ne, %148, %c0_i32_62 : i32
    scf.if %149 {
      %153 = vector.shape_cast %146 : vector<16x32xf32> to vector<1x16x32xf32>
      %c0_65 = arith.constant 0 : index
      %c0_66 = arith.constant 0 : index
      %c0_67 = arith.constant 0 : index
      %154 = vector.load %arg18[%c0_65, %c0_66, %c0_67] : memref<1x16x32xf32, #tpu.memory_space<vmem>>, vector<1x16x32xf32>
      tpu.vector_store %arg18[%c0_65, %c0_66, %c0_67], %153 {strides = array<i32>} : memref<1x16x32xf32, #tpu.memory_space<vmem>>, vector<1x16x32xf32>,
    } else {
    }
    %c1_i32_63 = arith.constant 1 : i32
    %150 = arith.cmpi eq, %arg1, %c1_i32_63 : i32
    %151 = arith.extui %150 : i1 to i32
    %c0_i32_64 = arith.constant 0 : i32
    %152 = arith.cmpi ne, %151, %c0_i32_64 : i32
    scf.if %152 {
      %c0_65 = arith.constant 0 : index
      %c0_66 = arith.constant 0 : index
      %153 = vector.load %arg16[%c0_65, %c0_66] : memref<1x32xf32, #tpu.memory_space<vmem>>, vector<1x32xf32>
      %c0_67 = arith.constant 0 : index
      %c0_68 = arith.constant 0 : index
      %154 = vector.load %arg17[%c0_67, %c0_68] : memref<1x32xf32, #tpu.memory_space<vmem>>, vector<1x32xf32>
      %cst_69 = arith.constant dense<0.000000e+00> : vector<16xf32>
      %155 = vector.multi_reduction <add>, %146, %cst_69 [1] : vector<16x32xf32> to vector<16xf32>
      %156 = vector.shape_cast %155 : vector<16xf32> to vector<16x1xf32>
      %cst_70 = arith.constant 3.200000e+01 : f32
      %157 = vector.broadcast %cst_70 : f32 to vector<16x1xf32>
      %158 = arith.divf %156, %157 : vector<16x1xf32>
      %159 = vector.broadcast %158 : vector<16x1xf32> to vector<16x32xf32>
      %160 = arith.subf %146, %159 : vector<16x32xf32>
      %161 = arith.mulf %160, %160 : vector<16x32xf32>
      %cst_71 = arith.constant dense<0.000000e+00> : vector<16xf32>
      %162 = vector.multi_reduction <add>, %161, %cst_71 [1] : vector<16x32xf32> to vector<16xf32>
      %163 = vector.shape_cast %162 : vector<16xf32> to vector<16x1xf32>
      %cst_72 = arith.constant 3.200000e+01 : f32
      %164 = vector.broadcast %cst_72 : f32 to vector<16x1xf32>
      %165 = arith.divf %163, %164 : vector<16x1xf32>
      %166 = vector.broadcast %158 : vector<16x1xf32> to vector<16x32xf32>
      %167 = arith.subf %146, %166 : vector<16x32xf32>
      %cst_73 = arith.constant 9.99999997E-7 : f32
      %168 = vector.broadcast %cst_73 : f32 to vector<16x1xf32>
      %169 = arith.addf %165, %168 : vector<16x1xf32>
      %170 = math.rsqrt %169 : vector<16x1xf32>
      %171 = vector.broadcast %170 : vector<16x1xf32> to vector<16x32xf32>
      %172 = arith.mulf %167, %171 : vector<16x32xf32>
      %173 = vector.broadcast %153 : vector<1x32xf32> to vector<16x32xf32>
      %174 = arith.mulf %172, %173 : vector<16x32xf32>
      %175 = vector.broadcast %154 : vector<1x32xf32> to vector<16x32xf32>
      %176 = arith.addf %174, %175 : vector<16x32xf32>
      %177 = vector.shape_cast %176 : vector<16x32xf32> to vector<1x16x32xf32>
      %c0_74 = arith.constant 0 : index
      %c0_75 = arith.constant 0 : index
      %c0_76 = arith.constant 0 : index
      %178 = vector.load %arg18[%c0_74, %c0_75, %c0_76] : memref<1x16x32xf32, #tpu.memory_space<vmem>>, vector<1x16x32xf32>
      tpu.vector_store %arg18[%c0_74, %c0_75, %c0_76], %177 {strides = array<i32>} : memref<1x16x32xf32, #tpu.memory_space<vmem>>, vector<1x16x32xf32>,
    } else {
    }
    return
  }
  func.func @transform_0(%arg0: i32, %arg1: i32) -> (i32, i32, i32) {
    %c0_i32 = arith.constant 0 : i32
    %c0_i32_0 = arith.constant 0 : i32
    %c0_i32_1 = arith.constant 0 : i32
    return %arg0, %c0_i32, %c0_i32_0 : i32, i32, i32
  }
  func.func @transform_1(%arg0: i32, %arg1: i32) -> (i32, i32) {
    %c0_i32 = arith.constant 0 : i32
    %c0_i32_0 = arith.constant 0 : i32
    %c0_i32_1 = arith.constant 0 : i32
    return %c0_i32, %c0_i32_0 : i32, i32
  }
  func.func @transform_2(%arg0: i32, %arg1: i32) -> (i32, i32, i32) {
    %c0_i32 = arith.constant 0 : i32
    %c0_i32_0 = arith.constant 0 : i32
    %c0_i32_1 = arith.constant 0 : i32
    return %arg1, %c0_i32, %c0_i32_0 : i32, i32, i32
  }
  func.func @transform_3(%arg0: i32, %arg1: i32) -> (i32, i32, i32) {
    %c0_i32 = arith.constant 0 : i32
    %c0_i32_0 = arith.constant 0 : i32
    %c0_i32_1 = arith.constant 0 : i32
    return %arg1, %c0_i32, %c0_i32_0 : i32, i32, i32
  }
  func.func @transform_4(%arg0: i32, %arg1: i32) -> (i32, i32, i32) {
    %c0_i32 = arith.constant 0 : i32
    %c0_i32_0 = arith.constant 0 : i32
    %c0_i32_1 = arith.constant 0 : i32
    return %arg1, %c0_i32, %c0_i32_0 : i32, i32, i32
  }
  func.func @transform_5(%arg0: i32, %arg1: i32) -> (i32, i32, i32) {
    %c0_i32 = arith.constant 0 : i32
    %c0_i32_0 = arith.constant 0 : i32
    %c0_i32_1 = arith.constant 0 : i32
    return %arg1, %c0_i32, %c0_i32_0 : i32, i32, i32
  }
  func.func @transform_6(%arg0: i32, %arg1: i32) -> (i32, i32, i32) {
    %c0_i32 = arith.constant 0 : i32
    %c0_i32_0 = arith.constant 0 : i32
    %c0_i32_1 = arith.constant 0 : i32
    return %arg1, %c0_i32, %c0_i32_0 : i32, i32, i32
  }
  func.func @transform_7(%arg0: i32, %arg1: i32) -> (i32, i32, i32) {
    %c0_i32 = arith.constant 0 : i32
    %c0_i32_0 = arith.constant 0 : i32
    %c0_i32_1 = arith.constant 0 : i32
    return %arg1, %c0_i32, %c0_i32_0 : i32, i32, i32
  }
  func.func @transform_8(%arg0: i32, %arg1: i32) -> (i32, i32, i32) {
    %c0_i32 = arith.constant 0 : i32
    %c0_i32_0 = arith.constant 0 : i32
    %c0_i32_1 = arith.constant 0 : i32
    return %arg1, %c0_i32, %c0_i32_0 : i32, i32, i32
  }
  func.func @transform_9(%arg0: i32, %arg1: i32) -> (i32, i32, i32) {
    %c0_i32 = arith.constant 0 : i32
    %c0_i32_0 = arith.constant 0 : i32
    %c0_i32_1 = arith.constant 0 : i32
    return %arg1, %c0_i32, %c0_i32_0 : i32, i32, i32
  }
  func.func @transform_10(%arg0: i32, %arg1: i32) -> (i32, i32, i32) {
    %c0_i32 = arith.constant 0 : i32
    %c0_i32_0 = arith.constant 0 : i32
    %c0_i32_1 = arith.constant 0 : i32
    return %arg1, %c0_i32, %c0_i32_0 : i32, i32, i32
  }
  func.func @transform_11(%arg0: i32, %arg1: i32) -> (i32, i32, i32) {
    %c0_i32 = arith.constant 0 : i32
    %c0_i32_0 = arith.constant 0 : i32
    %c0_i32_1 = arith.constant 0 : i32
    return %arg1, %c0_i32, %c0_i32_0 : i32, i32, i32
  }
  func.func @transform_12(%arg0: i32, %arg1: i32) -> (i32, i32, i32) {
    %c0_i32 = arith.constant 0 : i32
    %c0_i32_0 = arith.constant 0 : i32
    %c0_i32_1 = arith.constant 0 : i32
    return %arg1, %c0_i32, %c0_i32_0 : i32, i32, i32
  }
  func.func @transform_13(%arg0: i32, %arg1: i32) -> (i32, i32, i32) {
    %c0_i32 = arith.constant 0 : i32
    %c0_i32_0 = arith.constant 0 : i32
    %c0_i32_1 = arith.constant 0 : i32
    return %arg1, %c0_i32, %c0_i32_0 : i32, i32, i32
  }
  func.func @transform_14(%arg0: i32, %arg1: i32) -> (i32, i32) {
    %c0_i32 = arith.constant 0 : i32
    %c0_i32_0 = arith.constant 0 : i32
    %c0_i32_1 = arith.constant 0 : i32
    return %c0_i32, %c0_i32_0 : i32, i32
  }
  func.func @transform_15(%arg0: i32, %arg1: i32) -> (i32, i32) {
    %c0_i32 = arith.constant 0 : i32
    %c0_i32_0 = arith.constant 0 : i32
    %c0_i32_1 = arith.constant 0 : i32
    return %c0_i32, %c0_i32_0 : i32, i32
  }
  func.func @transform_16(%arg0: i32, %arg1: i32) -> (i32, i32, i32) {
    %c0_i32 = arith.constant 0 : i32
    %c0_i32_0 = arith.constant 0 : i32
    %c0_i32_1 = arith.constant 0 : i32
    return %arg0, %c0_i32, %c0_i32_0 : i32, i32, i32
  }
}

</mosaic_0001>

<bundles_post_ra>
// kernel: vit_decoder_forward.2
= control target key start
LH: loop header
LB: loop body
LE: loop exit
PB: predicated region body
PF: predicated region fallthrough
CT: control target
= control target key end

     0   :  { %s496_s18 = smov 0   ;;  %s534_s0 = inlined_call_operand.vmem [shape: bf16[2,16,48], index: 0, kind: input, shape index: {}]   ;;  %s535_s1 = inlined_call_operand.vmem [shape: f32[2,1,32], index: 1, kind: input, shape index: {}]   ;;  %s536_s2 = inlined_call_operand.vmem [shape: f32[1,16,32], index: 2, kind: input, shape index: {}]   ;;  %s537_s3 = inlined_call_operand.vmem [shape: bf16[48,32], index: 3, kind: input, shape index: {}]   ;;  %s538_s4 = inlined_call_operand.vmem [shape: f32[1,32], index: 4, kind: input, shape index: {}]   ;;  %s539_s5 = inlined_call_operand.vmem [shape: f32[2,16,32], index: 5, kind: output, shape index: {}]  }
   0x1 LB: > { %s408_s19 = sadd.s32 4294967295, %s462_s18   ;;  %p412_p0 = scmp.ge.s32.totalorder %s462_s18, 1  ;;  %s462_s18 = sphi %s496_s18, %s15_s18  }
   0x2   : > { %p195_p1 = scmp.lt.s32.totalorder %s462_s18, 3 }
   0x4   : > { %p196_p2 = pnand %p412_p0, %p195_p1 }
   0x5   : > { %v452_v0 = vld [vmem:[%s537_s3] sm:$0xff] (!%p196_p2)   ;;  %v464_v1 = vmov (!%p196_p2), 0.0   ;;  %v453_v2 = vld [vmem:[%s537_s3 + $0x8] sm:$0xff] (!%p196_p2)   ;;  %vm465_vm0 = vmmov (!%p196_p2), 0   ;;  %p226_p3 = scmp.lt.s32.totalorder (!%p196_p2), %s408_s19, 1  ;;  %v454_v3 = vld [vmem:[%s537_s3 + $0x10] sm:$0xff] (!%p196_p2)   ;;  %v323_v5 = vlaneseq (!%p196_p2) }
   0x6   : > { %199 = sbr.rel (%p196_p2) target bundleno = 237 (0xed), region = 40  ;;  %432 = vmatprep.subr.bf16.mxu0 (!%p196_p2), %v464_v1  ;;  %438 = vmatprep.mubr.msk.bf16.mxu0 (!%p196_p2), %vm465_vm0, %v464_v1  ;;  %vm278_vm1 = vcmask (!%p196_p2), 392192   ;;  %v417_v7 = vld [vmem:[%s538_s4] ss:$0 sm:$0xff] (!%p196_p2)  ;;  %v338_v14 = vld [vmem:[%s536_s2 + $0x8] sm:$0xff] (!%p196_p2)  ;;  %vm341_vm3 = vcmask (!%p196_p2), 261120  }
   0x7   : > { %433 = vmatpush3.bf16.msra.mxu0 (!%p196_p2), %v452_v0  ;;  %v324_v6 = vshrl.u32 (!%p196_p2), %v323_v5, 7  ;;  %v337_v11 = vld [vmem:[%s536_s2] sm:$0xff] (!%p196_p2) }
   0x8   : > { %434 = vmatprep.subr.bf16.mxu0 (!%p196_p2), %v464_v1 }
   0x9   : > { %vm333_vm2 = vcmp.eq.s32.totalorder (!%p196_p2), %v324_v6, 0 }
   0xb   : > { %435 = vmatpush3.bf16.msra.mxu0 (!%p196_p2), %v453_v2 }
   0xc   : > { %436 = vmatprep.subr.bf16.mxu0 (!%p196_p2), %v464_v1 }
   0xd   : > { %s541_s19 = smov (!%p226_p3, %s408_s19), 1 }
   0xe   : > { %s426_s26 = sshll.u32 %s541_s19, 3  ;;  %s233_s7 = scalar_lea.vmem %s535_s1, %s541_s19 }
   0xf   : > { %s230_s29 = scalar_lea.vmem %s534_s0, %s426_s26  ;;  %437 = vmatpush3.bf16.msra.mxu0 %v454_v3  ;;  %v423_v9 = vld [vmem:[%s233_s7] ss:$0 sm:$0xff]  ;;  %s427_s10 = sshll.u32 %s541_s19, 4 }
  0x10   : > { %v455_v4 = vld [vmem:[%s230_s29] sm:$0xff]   ;;  %s238_s17 = scalar_lea.vmem %s539_s5, %s427_s10 }
  0x12   : > { %439 = vmatmul.mubr.msk.bf16.vlgmr.msra.gmra.mrb[0].mxu0 %vm278_vm1, %v455_v4 }
  0xe5   : > { %v316_v8 = vpop.f32.mrb[0].mxu0 }
  0xe6   : > { %v317_v10 = vadd.f32 %v417_v7, %v316_v8  ;;  %v440_v12 = vpop.f32.mrb[1].mxu0 }
  0xe7   : > { %v319_v13 = vpop.f32.mrb[2].mxu0 }
  0xe8   : > { %v335_v15 = vsel %vm333_vm2, %v423_v9, %v317_v10  ;;  %v320_v16 = vadd.f32 %v417_v7, %v319_v13  ;;  %v441_v17 = vpop.f32.mrb[3].mxu0 }
  0xe9   : > { %v339_v18 = vadd.f32 %v337_v11, %v335_v15 }
  0xea   : > { %v340_v19 = vadd.f32 %v338_v14, %v320_v16 }
  0xeb   : > { %342 = vst.msk [vmem:[%s238_s17] sm:$0xff] %vm341_vm3, %v339_v18 }
  0xec   : > { %343 = vst.msk [vmem:[%s238_s17 + $0x8] sm:$0xff] %vm341_vm3, %v340_v19 }
  0xed PF: > { %s15_s18 = sadd.s32 1, %s462_s18  }
  0xee   : > { %p12_p4 = scmp.ge.s32.totalorder %s15_s18, 4  }
  0xf0   :  { %14 = sbr.rel (!%p12_p4) target bundleno = 1 (0x1), region = 73 }

// kernel: vit_decoder_forward.3
= control target key start
LH: loop header
LB: loop body
LE: loop exit
PB: predicated region body
PF: predicated region fallthrough
CT: control target
= control target key end

     0   :  { %s2923_s0 = inlined_call_operand.vmem [shape: f32[2,16,32], index: 0, kind: input, shape index: {}]   ;;  %s2924_s1 = inlined_call_operand.vmem [shape: f32[16,16], index: 1, kind: input, shape index: {}]   ;;  %s2925_s2 = inlined_call_operand.vmem [shape: f32[2,1,32], index: 2, kind: input, shape index: {}]   ;;  %s2926_s3 = inlined_call_operand.vmem [shape: f32[2,1,32], index: 3, kind: input, shape index: {}]   ;;  %s2927_s4 = inlined_call_operand.vmem [shape: bf16[2,32,96], index: 4, kind: input, shape index: {}]   ;;  %s2928_s5 = inlined_call_operand.vmem [shape: f32[2,1,96], index: 5, kind: input, shape index: {}]   ;;  %s2929_s6 = inlined_call_operand.vmem [shape: bf16[2,32,32], index: 6, kind: input, shape index: {}]   ;;  %s2930_s7 = inlined_call_operand.vmem [shape: f32[2,1,32], index: 7, kind: input, shape index: {}]   ;;  %s2931_s8 = inlined_call_operand.vmem [shape: f32[2,1,32], index: 8, kind: input, shape index: {}]   ;;  %s2932_s9 = inlined_call_operand.vmem [shape: f32[2,1,32], index: 9, kind: input, shape index: {}]   ;;  %s2933_s10 = inlined_call_operand.vmem [shape: bf16[2,32,128], index: 10, kind: input, shape index: {}]   ;;  %s2934_s11 = inlined_call_operand.vmem [shape: f32[2,1,128], index: 11, kind: input, shape index: {}]   ;;  %s2935_s12 = inlined_call_operand.vmem [shape: bf16[2,128,32], index: 12, kind: input, shape index: {}]   ;;  %s2936_s13 = inlined_call_operand.vmem [shape: f32[2,1,32], index: 13, kind: input, shape index: {}]   ;;  %s2937_s14 = inlined_call_operand.vmem [shape: f32[1,32], index: 14, kind: input, shape index: {}]   ;;  %s2938_s15 = inlined_call_operand.vmem [shape: f32[1,32], index: 15, kind: input, shape index: {}]   ;;  %s2939_s16 = inlined_call_operand.hbm [shape: f32[2,16,32], index: 16, kind: output, shape index: {}]  }
   0x1   :  { %2956 = sst [smem:[#allocation18_spill]] %s2923_s0 }
   0x2   :  { %2957 = sst [smem:[#allocation19_spill]] %s2924_s1 }
   0x3   :  { %2958 = sst [smem:[#allocation20_spill]] %s2927_s4 }
   0x4   :  { %2959 = sst [smem:[#allocation21_spill]] %s2929_s6 }
   0x5   :  { %2960 = sst [smem:[#allocation22_spill]] %s2931_s8 }
   0x6   :  { %2961 = sst [smem:[#allocation23_spill]] %s2935_s12 }
   0x7   :  { %2962 = sst [smem:[#allocation24_spill]] %s2937_s14 }
   0x8   :  { %2963 = sst [smem:[#allocation25_spill]] %s2938_s15 }
   0x9   :  { %2964 = sst [smem:[#allocation26_spill]] %s2939_s16 }
   0xa   :  { %21 = vsyncpa [#allocation3], 0 }
   0xb   :  { %23 = vsyncpa [#allocation3 + $0x1], 0  ;;  %s2492_s21 = smov 0   ;;  %s2494_s22 = smov 0  }
   0xc   :  { %s2496_s23 = smov 0   ;;  %s2498_s24 = smov 0  }
   0xd   :  { %s2500_s25 = smov 0   ;;  %s2502_s26 = smov 0  }
   0xe   :  { %s2504_s27 = smov 0   ;;  %s2506_s28 = smov 0  }
   0xf LB: > { %2965 = sst [smem:[#allocation5_spill]] %s2365_s21  ;;  %s1949_s29 = sadd.s32 4294967295, %s2393_s28   ;;  %s2393_s28 = sphi %s2506_s28, %s29_s28   ;;  %s2389_s27 = sphi %s2504_s27, %s3011_s27   ;;  %s2385_s26 = sphi %s2502_s26, %s3010_s26   ;;  %s2381_s25 = sphi %s2500_s25, %s3009_s25   ;;  %s2377_s24 = sphi %s2498_s24, %s3008_s24   ;;  %s2373_s23 = sphi %s2496_s23, %s3007_s23   ;;  %s2369_s22 = sphi %s2494_s22, %s3006_s22   ;;  %s2365_s21 = sphi %s2492_s21, %s3005_s21  }
  0x10   : > { %2966 = sst [smem:[#allocation6_spill]] %s2369_s22  ;;  %s1950_s30 = sadd.s32 4294967294, %s2393_s28  }
  0x11   : > { %2967 = sst [smem:[#allocation7_spill]] %s2373_s23  ;;  %s38_s0 = sadd.s32 1, %s2385_s26 }
  0x12   : > { %2968 = sst [smem:[#allocation8_spill]] %s2377_s24  ;;  %p39_p0 = scmp.ge.s32.totalorder %s38_s0, 2 }
  0x13   : > { %2969 = sst [smem:[#allocation9_spill]] %s2381_s25  ;;  %s41_s17 = sadd.s32 1, %s2389_s27 }
  0x14   : > { %2970 = sst [smem:[#allocation10_spill]] %s2385_s26  ;;  %p459_p1 = scmp.ne.s32.totalorder %s2373_s23, %s2369_s22 }
  0x15   : > { %2971 = sst [smem:[#allocation11_spill]] %s2389_s27  ;;  %p460_p2 = scmp.eq.s32.totalorder %s1949_s29, 3 }
  0x16   : > { %2972 = sst [smem:[#allocation12_spill]] %s2393_s28  ;;  %s3013_s0 = smov (%p39_p0, %s38_s0), 0 }
  0x17   : > { %2973 = sst [smem:[#allocation13_spill]] %s3013_s0  ;;  %s3015_s17 = smov (!%p39_p0, %s41_s17), %s2389_s27 }
  0x18   : > { %p2541_p3 = por %p460_p2, %p459_p1  ;;  %p465_p4 = scmp.ne.s32.totalorder %s2369_s22, %s2365_s21 }
  0x19   : > { %p43_p5 = scmp.ge.s32.totalorder %s3015_s17, 2  ;;  %p466_p6 = scmp.eq.s32.totalorder %s1950_s30, 3 }
  0x1a   : > { %s2974_s18 = scalar_select %p2541_p3, 1, 0 }
  0x1b   : > { %p1953_p7 = scmp.ge.s32.totalorder %s2393_s28, 1  ;;  %p581_p8 = scmp.lt.s32.totalorder %s2393_s28, 5 }
  0x1c   : > { %2975 = sst [smem:[#allocation14_spill]] %s2974_s18  ;;  %s3017_s17 = smov (%p43_p5, %s3015_s17), 0 }
  0x1d   : > { %2976 = sst [smem:[#allocation15_spill]] %s3017_s17  ;;  %p2551_p9 = por %p466_p6, %p465_p4 }
  0x1e   : > { %p582_p10 = pnand %p1953_p7, %p581_p8  ;;  %s446_s20 = ssub.s32 %s2389_s27, %s3017_s17 }
  0x1f   : > { %s2977_s19 = scalar_select %p2551_p9, 1, 0 }
  0x20   : > { %s449_s29 = sadd.s32 1, %s2373_s23  ;;  %p447_p11 = scmp.eq.s32.totalorder %s446_s20, 0 }
  0x21   : > { %2978 = sst [smem:[#allocation16_spill]] %s2977_s19  ;;  %585 = sbr.rel (%p582_p10) target bundleno = 3104 (0xc20), region = 84 }
  0x22   : > { %s2559_s0 = scalar_select %p447_p11, %s2373_s23, %s449_s29  }
  0x23   : > { %s2945_s30 = sand.u32 (!%p582_p10), 1, %s2369_s22   ;;  %p675_p12 = scmp.lt.s32.totalorder (!%p582_p10), %s2381_s25, 1 }
  0x24   : > { %2979 = sst [smem:[#allocation17_spill]] %s2559_s0  ;;  %s1954_s26 = sshll.u32 (!%p582_p10), %s2945_s30, 4 }
  0x25   : > { %p680_p13 = scmp.lt.s32.totalorder (!%p582_p10), %s2377_s24, 1  ;;  %s2980_s27 = sld [smem:[#allocation18_spill]] (!%p582_p10) }
  0x26   : > { %s2981_s4 = sld [smem:[#allocation20_spill]] (!%p582_p10)  ;;  %s2982_s6 = sld [smem:[#allocation21_spill]] (!%p582_p10) }
  0x27   : > { %s2984_s22 = sld [smem:[#allocation23_spill]] (!%p582_p10)  ;;  %s2627_s14 = scalar_lea.vmem (!%p582_p10), [#allocation2], %s1954_s26 }
  0x28   : > { %s676_s21 = scalar_select %p675_p12, %s2381_s25, 1 }
  0x29   : > { %s2568_s19 = scalar_select %p680_p13, %s2377_s24, 1 }
  0x2a   : > { %s2008_s20 = sshll.u32 %s676_s21, 4  ;;  %s2985_s15 = sld [smem:[#allocation8_spill]] }
  0x2b   : > { %s679_s0 = scalar_lea.vmem %s2980_s27, %s2008_s20  ;;  %s2009_s25 = sshll.u32 %s2568_s19, 4 }
  0x2c   : > { %s2585_s1 = scalar_lea.vmem %s2981_s4, %s2009_s25  ;;  %s2594_s20 = scalar_lea.vmem %s2982_s6, %s2009_s25 }
  0x2d   : > { %s707_s28 = scalar_lea.vmem %s2932_s9, %s2568_s19  ;;  %s2611_s21 = scalar_lea.vmem %s2933_s10, %s2009_s25 }
  0x2e   : > { %s715_s12 = scalar_lea.vmem %s2934_s11, %s2568_s19  ;;  %s2012_s6 = sshll.u32 %s2568_s19, 6 }
  0x2f   : > { %s723_s16 = scalar_lea.vmem %s2936_s13, %s2568_s19  ;;  %s2625_s8 = scalar_lea.vmem %s2984_s22, %s2012_s6 }
  0x30   : > { %p1965_p0 = scmp.ne.s32.totalorder %s2985_s15, 0 }
  0x31   : > { %v729_v0 = vld [vmem:[%s679_s0] sm:$0xff] (!%p1965_p0)  ;;  %vm731_vm0 = vcmask (!%p1965_p0), 261120   ;;  %v730_v1 = vld [vmem:[%s679_s0 + $0x8] sm:$0xff] (!%p1965_p0) }
  0x32   : > { %728 = sbr.rel (%p1965_p0) target bundleno = 57 (0x39), region = 88  ;;  %732 = vst.msk [vmem:[%s2627_s14] sm:$0xff] (!%p1965_p0), %vm731_vm0, %v729_v0  ;;  %733 = vst.msk [vmem:[%s2627_s14 + $0x8] sm:$0xff] (!%p1965_p0), %vm731_vm0, %v730_v1 }
  0x39 PF: > { %v2633_v2 = vld [vmem:[%s2627_s14] sm:$0xff]  ;;  %vm738_vm1 = vcmask 261120   ;;  %v2636_v3 = vld [vmem:[%s2627_s14 + $0x8] sm:$0xff]  ;;  %v2395_v17 = vmov 0.0   ;;  %vm2396_vm2 = vmmov 0   ;;  %s2986_s6 = scalar_lea.vmem %s2925_s2, %s2568_s19  ;;  %s2987_s26 = scalar_lea.vmem %s2926_s3, %s2568_s19  ;;  %vm872_vm3 = vcmask 64512  }
  0x3a   : > { %v739_v4 = vsel %vm738_vm1, %v2633_v2, 0.0  ;;  %v742_v5 = vsel %vm738_vm1, %v2636_v3, 0.0  ;;  %v2237_v16 = vld [vmem:[%s2585_s1] sm:$0xff]   ;;  %2048 = vmatprep.subr.bf16.mxu0 %v2395_v17  ;;  %2068 = vmatprep.subr.bf16.mxu1 %v2395_v17  ;;  %v2238_v18 = vld [vmem:[%s2585_s1 + $0x8] sm:$0xff]   ;;  %s2988_s17 = scalar_lea.vmem %s2928_s5, %s2568_s19  ;;  %s2397_s27 = smov 112   ;;  %vm1067_vm4 = vcmask 130048  }
  0x3b   : > { %740 = vadd.xlane.f32.xlu0 %v739_v4  ;;  %2049 = vmatpush3.bf16.msra.mxu0 %v2237_v16  ;;  %v1966_v27 = vld [vmem:[%s2986_s6] ss:$0 sm:$0xff]  ;;  %s2398_s23 = smov 120   ;;  %s2399_s30 = smov 104   ;;  %vm1376_vm5 = vcmask 195584  }
  0x3c   : > { %2052 = vmatprep.mubr.msk.bf16.mxu0 %vm2396_vm2, %v2395_v17  ;;  %2050 = vmatprep.subr.bf16.mxu0 %v2395_v17  ;;  %v1967_v31 = vld [vmem:[%s2987_s26] ss:$0 sm:$0xff]  ;;  %s2400_s18 = smov 96   ;;  %s2989_s1 = sld [smem:[#allocation19_spill]] }
  0x3d   : > { %2070 = vmatprep.mubr.msk.bf16.mxu1 %vm2396_vm2, %v2395_v17  ;;  %v1968_v36 = vld [vmem:[%s2988_s17] ss:$0 sm:$0xff]  ;;  %s2401_s22 = smov 64   ;;  %s2402_s25 = smov 8  }
  0x3e   : > { %s2403_s26 = smov 16   ;;  %s2404_s0 = smov 24  }
  0x3f   : > { %743 = vadd.xlane.f32.xlu0 %v742_v5  ;;  %2051 = vmatpush3.bf16.msra.mxu0 %v2238_v18  ;;  %s2990_s17 = scalar_lea.vmem %s2930_s7, %s2568_s19  ;;  %s2993_s4 = sld [smem:[#allocation8_spill]] }
  0x40   : > { %2056 = vmatprep.subr.bf16.mxu0 %v2395_v17 }
  0x42   : > { %v868_v61 = vld [vmem:[%s2989_s1] sm:$0xff]  ;;  %v869_v63 = vld [vmem:[%s2989_s1 + $0x8] sm:$0xff] }
  0x45   : > { %p1999_p1 = scmp.ge.s32.totalorder %s2993_s4, 1 }
  0xc8   : > { %v741_v6 = vpop.xlane.xlu0 %740 }
  0xc9   : > { %v746_v7 = vmul.f32 0.03125, %v741_v6 }
  0xcb   : > { %v748_v8 = vsub.f32 %v2633_v2, %v746_v7 }
  0xcc   : > { %v744_v9 = vpop.xlane.xlu0 %743 }
  0xcd   : > { %v747_v10 = vmul.f32 0.03125, %v744_v9  ;;  %v750_v11 = vmul.f32 %v748_v8, %v748_v8 }
  0xcf   : > { %v749_v12 = vsub.f32 %v2636_v3, %v747_v10  ;;  %v752_v13 = vsel %vm738_vm1, %v750_v11, 0.0 }
  0xd0   : > { %753 = vadd.xlane.f32.xlu1 %v752_v13 }
  0xd1   : > { %v751_v14 = vmul.f32 %v749_v12, %v749_v12 }
  0xd3   : > { %v755_v15 = vsel %vm738_vm1, %v751_v14, 0.0 }
  0xd4   : > { %756 = vadd.xlane.f32.xlu1 %v755_v15 }
 0x15d   : > { %v754_v19 = vpop.xlane.xlu1 %753 }
 0x15e   : > { %v758_v20 = vmul.f32 0.03125, %v754_v19 }
 0x160   : > { %v760_v21 = vadd.f32 1e-06, %v758_v20 }
 0x161   : > { %v757_v22 = vpop.xlane.xlu1 %756 }
 0x162   : > { %2251 = vrsqrt.f32 %v760_v21  ;;  %v759_v23 = vmul.f32 0.03125, %v757_v22 }
 0x164   : > { %v761_v24 = vadd.f32 1e-06, %v759_v23 }
 0x166   : > { %2253 = vrsqrt.f32 %v761_v24 }
 0x16c   : > { %v2252_v25 = vpop.eup %2251 }
 0x16d   : > { %v764_v26 = vmul.f32 %v2252_v25, %v748_v8 }
 0x16f   : > { %v772_v30 = vmul.f32 %v1966_v27, %v764_v26 }
 0x170   : > { %v2254_v28 = vpop.eup %2253 }
 0x171   : > { %v765_v29 = vmul.f32 %v2254_v28, %v749_v12  ;;  %v780_v33 = vadd.f32 %v1967_v31, %v772_v30 }
 0x173   : > { %v773_v32 = vmul.f32 %v1966_v27, %v765_v29 }
 0x175   : > { %v781_v34 = vadd.f32 %v1967_v31, %v773_v32 }
 0x177   : > { %v782_v35 = vpack.c.bf16 %v781_v34, %v780_v33 }
 0x179   : > { %2053 = vmatmul.mubr.msk.bf16.vlgmr.msra.gmra.mrb[0].mxu0 %vm738_vm1, %v782_v35 }
 0x17a   : > { %2058 = vmatprep.mubr.msk.bf16.mxu0 %vm2396_vm2, %v2395_v17 }
 0x24c   : > { %v843_v37 = vpop.f32.mrb[0].mxu0 }
 0x24d   : > { %v844_v38 = vadd.f32 %v1968_v36, %v843_v37  ;;  %v2054_v39 = vpop.f32.mrb[1].mxu0 }
 0x24e   : > { %v846_v40 = vpop.f32.mrb[2].mxu0 }
 0x24f   : > { %v847_v41 = vadd.f32 %v1968_v36, %v846_v40  ;;  %v2055_v42 = vpop.f32.mrb[3].mxu0  ;;  %v850_v43 = vmul.f32 0.35355338, %v844_v38 }
 0x251   : > { %v851_v44 = vmul.f32 0.35355338, %v847_v41  ;;  %v2674_v45 = vpack.c.bf16 %v847_v41, %v844_v38 }
 0x253   : > { %v852_v46 = vpack.c.bf16 %v851_v44, %v850_v43  ;;  %864 = vrot.lane.b32.xlu1 %v2674_v45, %s2397_s27  ;;  %862 = vrot.lane.b32.xlu0 %v2674_v45, %s2398_s23 }
 0x257   : > { %866 = vrot.lane.b32.xlu1 %v2674_v45, %s2399_s30 }
 0x25b   : > { %870 = vrot.lane.b32.xlu1 %v2674_v45, %s2400_s18 }
 0x2c5   : > { %v2680_v47 = vpop.permute.xlu1 %864  ;;  %v2682_v48 = vpop.permute.xlu0 %862 }
 0x2c6   : > { %969 = vrot.lane.b32.xlu1 %v2680_v47, %s2400_s18  ;;  %920 = vrot.lane.b32.xlu0 %v2682_v48, %s2400_s18 }
 0x2c9   : > { %v2686_v49 = vpop.permute.xlu1 %866 }
 0x2ca   : > { %1018 = vrot.lane.b32.xlu1 %v2686_v49, %s2400_s18  ;;  %855 = vrot.lane.b32.xlu0 %v852_v46, %s2398_s23  ;;  %s2991_s23 = sld [smem:[#allocation22_spill]] }
 0x2cd   : > { %v871_v50 = vpop.permute.xlu1 %870 }
 0x2ce   : > { %v877_v51 = vsel %vm872_vm3, %v871_v50, 0  ;;  %859 = vrot.lane.b32.xlu1 %v852_v46, %s2399_s30  ;;  %857 = vrot.lane.b32.xlu0 %v852_v46, %s2397_s27 }
 0x2cf   : > { %2057 = vmatpush3.bf16.xpose.msra.mxu0 %v877_v51 }
 0x2d0   : > { %2062 = vmatprep.subr.bf16.mxu0 %v2395_v17  ;;  %s2992_s30 = scalar_lea.vmem %s2991_s23, %s2568_s19 }
 0x2d6   : > { %2059 = vmatmul.mubr.msk.bf16.vlgmr.msra.gmra.mrb[4].mxu0 %vm872_vm3, %v852_v46 }
 0x2d7   : > { %2064 = vmatprep.mubr.msk.bf16.mxu0 %vm2396_vm2, %v2395_v17 }
 0x338   : > { %v970_v52 = vpop.permute.xlu1 %969  ;;  %v921_v53 = vpop.permute.xlu0 %920 }
 0x339   : > { %v926_v54 = vsel %vm872_vm3, %v921_v53, 0  ;;  %v975_v55 = vsel %vm872_vm3, %v970_v52, 0 }
 0x33a   : > { %2063 = vmatpush3.bf16.xpose.msra.mxu0 %v926_v54  ;;  %2069 = vmatpush3.bf16.xpose.msra.mxu1 %v975_v55 }
 0x33b   : > { %2074 = vmatprep.subr.bf16.mxu0 %v2395_v17  ;;  %2080 = vmatprep.subr.bf16.mxu1 %v2395_v17 }
 0x33c   : > { %v856_v56 = vpop.permute.xlu0 %855  ;;  %v1019_v57 = vpop.permute.xlu1 %1018 }
 0x33d   : > { %v1024_v59 = vsel %vm872_vm3, %v1019_v57, 0 }
 0x340   : > { %v858_v58 = vpop.permute.xlu0 %857  ;;  %v860_v60 = vpop.permute.xlu1 %859 }
 0x341   : > { %2065 = vmatmul.mubr.msk.bf16.vlgmr.msra.gmra.mrb[8].mxu0 %vm872_vm3, %v856_v56  ;;  %2071 = vmatmul.mubr.msk.bf16.vlgmr.msra.gmra.mrb[0].mxu1 %vm872_vm3, %v858_v58 }
 0x342   : > { %2075 = vmatpush3.bf16.xpose.msra.mxu0 %v1024_v59  ;;  %2076 = vmatprep.mubr.msk.bf16.mxu0 %vm2396_vm2, %v2395_v17 }
 0x343   : > { %2086 = vmatprep.subr.bf16.mxu0 %v2395_v17  ;;  %2082 = vmatprep.mubr.msk.bf16.mxu1 %vm2396_vm2, %v2395_v17 }
 0x349   : > { %2077 = vmatmul.mubr.msk.bf16.vlgmr.msra.gmra.mrb[12].mxu0 %vm872_vm3, %v860_v60 }
 0x34a   : > { %2088 = vmatprep.mubr.msk.bf16.mxu0 %vm2396_vm2, %v2395_v17 }
 0x3a9   : > { %v913_v62 = vpop.f32.mrb[4].mxu0 }
 0x3aa   : > { %v914_v0 = vadd.f32 %v913_v62, %v868_v61  ;;  %v2060_v1 = vpop.f32.mrb[5].mxu0 }
 0x3ab   : > { %v916_v4 = vpop.f32.mrb[6].mxu0 }
 0x3ac   : > { %v917_v5 = vadd.f32 %v916_v4, %v869_v63  ;;  %v2061_v6 = vpop.f32.mrb[7].mxu0  ;;  %v1068_v7 = vsel %vm1067_vm4, %v914_v0, -inf }
 0x3ad   : > { %1069 = vmax.xlane.f32.xlu0 %v1068_v7 }
 0x3ae   : > { %v1071_v8 = vsel %vm1067_vm4, %v917_v5, -inf }
 0x3af   : > { %1072 = vmax.xlane.f32.xlu1 %v1071_v8 }
 0x414   : > { %v962_v9 = vpop.f32.mrb[8].mxu0  ;;  %v1011_v10 = vpop.f32.mrb[0].mxu1 }
 0x415   : > { %v963_v11 = vadd.f32 %v962_v9, %v868_v61  ;;  %v2066_v12 = vpop.f32.mrb[9].mxu0  ;;  %v2072_v13 = vpop.f32.mrb[1].mxu1  ;;  %v1012_v23 = vadd.f32 %v1011_v10, %v868_v61 }
 0x416   : > { %v965_v14 = vpop.f32.mrb[10].mxu0  ;;  %v1014_v15 = vpop.f32.mrb[2].mxu1 }
 0x417   : > { %v966_v16 = vadd.f32 %v965_v14, %v869_v63  ;;  %v1015_v18 = vadd.f32 %v1014_v15, %v869_v63  ;;  %v2067_v19 = vpop.f32.mrb[11].mxu0  ;;  %v2073_v20 = vpop.f32.mrb[3].mxu1  ;;  %v1074_v21 = vsel %vm1067_vm4, %v963_v11, -inf  ;;  %v1080_v31 = vsel %vm1067_vm4, %v1012_v23, -inf }
 0x418   : > { %1075 = vmax.xlane.f32.xlu0 %v1074_v21 }
 0x419   : > { %v1083_v22 = vsel %vm1067_vm4, %v1015_v18, -inf  ;;  %v1077_v24 = vsel %vm1067_vm4, %v966_v16, -inf }
 0x41a   : > { %1084 = vmax.xlane.f32.xlu1 %v1083_v22 }
 0x41c   : > { %1078 = vmax.xlane.f32.xlu0 %v1077_v24  ;;  %v1060_v25 = vpop.f32.mrb[12].mxu0 }
 0x41d   : > { %v2078_v26 = vpop.f32.mrb[13].mxu0  ;;  %v1061_v28 = vadd.f32 %v1060_v25, %v868_v61 }
 0x41e   : > { %v1063_v27 = vpop.f32.mrb[14].mxu0 }
 0x41f   : > { %v2720_v29 = vadd.f32 %v1063_v27, %v869_v63  ;;  %v2079_v30 = vpop.f32.mrb[15].mxu0  ;;  %v1086_v33 = vsel %vm1067_vm4, %v1061_v28, -inf }
 0x420   : > { %1081 = vmax.xlane.f32.xlu0 %v1080_v31 }
 0x421   : > { %v1089_v32 = vsel %vm1067_vm4, %v2720_v29, -inf }
 0x422   : > { %1090 = vmax.xlane.f32.xlu1 %v1089_v32 }
 0x424   : > { %1087 = vmax.xlane.f32.xlu0 %v1086_v33 }
 0x43a   : > { %v1070_v34 = vpop.xlane.xlu0 %1069 }
 0x43b   : > { %v1092_v35 = vsub.f32 %v914_v0, %v1070_v34 }
 0x43c   : > { %v1073_v36 = vpop.xlane.xlu1 %1072 }
 0x43d   : > { %v1100_v37 = vmul.f32 1.442695, %v1092_v35  ;;  %v1093_v38 = vsub.f32 %v917_v5, %v1073_v36 }
 0x43f   : > { %2255 = vpow2.f32 %v1100_v37  ;;  %v1102_v39 = vmul.f32 1.442695, %v1093_v38 }
 0x441   : > { %2257 = vpow2.f32 %v1102_v39 }
 0x449   : > { %v2726_v40 = vpop.eup %2255 }
 0x44a   : > { %v1116_v41 = vsel %vm1067_vm4, %v2726_v40, 0.0 }
 0x44b   : > { %v2730_v42 = vpop.eup %2257  ;;  %1117 = vadd.xlane.f32.xlu0 %v1116_v41 }
 0x44c   : > { %v1119_v43 = vsel %vm1067_vm4, %v2730_v42, 0.0 }
 0x44d   : > { %1120 = vadd.xlane.f32.xlu1 %v1119_v43 }
 0x4a5   : > { %v1076_v44 = vpop.xlane.xlu0 %1075 }
 0x4a6   : > { %v1094_v46 = vsub.f32 %v963_v11, %v1076_v44 }
 0x4a7   : > { %v1085_v50 = vpop.xlane.xlu1 %1084 }
 0x4a8   : > { %v1104_v51 = vmul.f32 1.442695, %v1094_v46  ;;  %v1097_v52 = vsub.f32 %v1015_v18, %v1085_v50 }
 0x4a9   : > { %v1079_v53 = vpop.xlane.xlu0 %1078 }
 0x4aa   : > { %2259 = vpow2.f32 %v1104_v51  ;;  %v1095_v54 = vsub.f32 %v966_v16, %v1079_v53  ;;  %v1110_v55 = vmul.f32 1.442695, %v1097_v52 }
 0x4ac   : > { %v1106_v56 = vmul.f32 1.442695, %v1095_v54 }
 0x4ad   : > { %v1082_v57 = vpop.xlane.xlu0 %1081 }
 0x4ae   : > { %2261 = vpow2.f32 %v1106_v56  ;;  %v1096_v58 = vsub.f32 %v1012_v23, %v1082_v57 }
 0x4af   : > { %2263 = vpow2.f32 %v1110_v55  ;;  %v1091_v11 = vpop.xlane.xlu1 %1090  ;;  %v2239_v55 = vld [vmem:[%s2594_s20] sm:$0xff]  }
 0x4b0   : > { %v1108_v59 = vmul.f32 1.442695, %v1096_v58  ;;  %v1099_v12 = vsub.f32 %v2720_v29, %v1091_v11 }
 0x4b1   : > { %v1088_v60 = vpop.xlane.xlu0 %1087 }
 0x4b2   : > { %2265 = vpow2.f32 %v1108_v59  ;;  %v1098_v61 = vsub.f32 %v1061_v28, %v1088_v60  ;;  %v1114_v13 = vmul.f32 1.442695, %v1099_v12 }
 0x4b4   : > { %v2260_v62 = vpop.eup %2259  ;;  %v1112_v63 = vmul.f32 1.442695, %v1098_v61 }
 0x4b5   : > { %v1122_v0 = vsel %vm1067_vm4, %v2260_v62, 0.0 }
 0x4b6   : > { %2267 = vpow2.f32 %v1112_v63  ;;  %1123 = vadd.xlane.f32.xlu0 %v1122_v0  ;;  %v2240_v0 = vld [vmem:[%s2594_s20 + $0x8] sm:$0xff]  }
 0x4b7   : > { %2269 = vpow2.f32 %v1114_v13 }
 0x4b8   : > { %v2262_v1 = vpop.eup %2261 }
 0x4b9   : > { %v1125_v4 = vsel %vm1067_vm4, %v2262_v1, 0.0  ;;  %v2264_v5 = vpop.eup %2263 }
 0x4ba   : > { %1126 = vadd.xlane.f32.xlu1 %v1125_v4  ;;  %v1131_v8 = vsel %vm1067_vm4, %v2264_v5, 0.0 }
 0x4bc   : > { %v2266_v6 = vpop.eup %2265 }
 0x4bd   : > { %v1128_v7 = vsel %vm1067_vm4, %v2266_v6, 0.0 }
 0x4be   : > { %1129 = vadd.xlane.f32.xlu0 %v1128_v7  ;;  %1132 = vadd.xlane.f32.xlu1 %v1131_v8 }
 0x4c0   : > { %v2738_v9 = vpop.eup %2267 }
 0x4c1   : > { %v1134_v10 = vsel %vm1067_vm4, %v2738_v9, 0.0  ;;  %v2270_v14 = vpop.eup %2269 }
 0x4c2   : > { %1135 = vadd.xlane.f32.xlu0 %v1134_v10  ;;  %v1137_v15 = vsel %vm1067_vm4, %v2270_v14, 0.0 }
 0x4cf   : > { %1207 = vrot.lane.b32.xlu1 %v2682_v48, %s2401_s22 }
 0x4d3   : > { %1254 = vrot.lane.b32.xlu1 %v2680_v47, %s2401_s22 }
 0x4d8   : > { %1160 = vrot.lane.b32.xlu0 %v2674_v45, %s2401_s22  ;;  %v1118_v16 = vpop.xlane.xlu0 %1117 }
 0x4da   : > { %v1121_v18 = vpop.xlane.xlu1 %1120 }
 0x4db   : > { %2271 = vrcp.f32 %v1121_v18 }
 0x4dc   : > { %2273 = vrcp.f32 %v1118_v16 }
 0x4e5   : > { %v2272_v20 = vpop.eup %2271 }
 0x4e6   : > { %v2274_v21 = vpop.eup %2273 }
 0x4e7   : > { %v1141_v26 = vmul.f32 %v2274_v21, %v2726_v40 }
 0x4f7   : > { %1138 = vadd.xlane.f32.xlu1 %v1137_v15 }
 0x508   : > { %1301 = vrot.lane.b32.xlu1 %v2686_v49, %s2401_s22  ;;  %v1143_v49 = vmul.f32 %v2272_v20, %v2730_v42 }
 0x50a   : > { %v1156_v30 = vpack.c.bf16 %v1143_v49, %v1141_v26 }
 0x543   : > { %v1124_v19 = vpop.xlane.xlu0 %1123 }
 0x544   : > { %2275 = vrcp.f32 %v1124_v19 }
 0x547   : > { %v1127_v47 = vpop.xlane.xlu1 %1126 }
 0x548   : > { %2277 = vrcp.f32 %v1127_v47 }
 0x54b   : > { %v1130_v45 = vpop.xlane.xlu0 %1129  ;;  %v1133_v48 = vpop.xlane.xlu1 %1132 }
 0x54c   : > { %2279 = vrcp.f32 %v1130_v45 }
 0x54d   : > { %2281 = vrcp.f32 %v1133_v48 }
 0x54e   : > { %v2276_v24 = vpop.eup %2275 }
 0x54f   : > { %v1136_v22 = vpop.xlane.xlu0 %1135  ;;  %v1208_v23 = vpop.permute.xlu1 %1207  ;;  %v1145_v27 = vmul.f32 %v2276_v24, %v2260_v62 }
 0x550   : > { %2087 = vmatpush3.bf16.msra.mxu0 %v1208_v23  ;;  %2283 = vrcp.f32 %v1136_v22  ;;  %v1980_v22 = vld [vmem:[%s2990_s17] ss:$0 sm:$0xff] }
 0x551   : > { %2098 = vmatprep.subr.bf16.mxu0 %v2395_v17 }
 0x552   : > { %v2278_v25 = vpop.eup %2277 }
 0x553   : > { %v1147_v28 = vmul.f32 %v2278_v25, %v2262_v1  ;;  %v1161_v29 = vpop.permute.xlu0 %1160  ;;  %v1255_v34 = vpop.permute.xlu1 %1254 }
 0x554   : > { %2081 = vmatpush3.bf16.msra.mxu1 %v1161_v29 }
 0x555   : > { %v1157_v31 = vpack.c.bf16 %v1147_v28, %v1145_v27  ;;  %2092 = vmatprep.subr.bf16.mxu1 %v2395_v17 }
 0x556   : > { %v2280_v32 = vpop.eup %2279 }
 0x557   : > { %v2282_v33 = vpop.eup %2281  ;;  %2083 = vmatmul.mubr.msk.bf16.vlgmr.msra.gmra.mrb[4].mxu1 %vm1067_vm4, %v1156_v30  ;;  %2089 = vmatmul.mubr.msk.bf16.vlgmr.msra.gmra.mrb[16].mxu0 %vm1067_vm4, %v1157_v31  ;;  %v1149_v35 = vmul.f32 %v2280_v32, %v2266_v6 }
 0x558   : > { %2093 = vmatpush3.bf16.msra.mxu1 %v1255_v34  ;;  %2094 = vmatprep.mubr.msk.bf16.mxu1 %vm2396_vm2, %v2395_v17  ;;  %v1151_v36 = vmul.f32 %v2282_v33, %v2264_v5 }
 0x559   : > { %2100 = vmatprep.mubr.msk.bf16.mxu0 %vm2396_vm2, %v2395_v17  ;;  %2104 = vmatprep.subr.bf16.mxu1 %v2395_v17 }
 0x55a   : > { %v1158_v37 = vpack.c.bf16 %v1151_v36, %v1149_v35  ;;  %v2284_v40 = vpop.eup %2283 }
 0x55b   : > { %v1153_v42 = vmul.f32 %v2284_v40, %v2738_v9  ;;  %v2241_v40 = vld [vmem:[%s2611_s21] sm:$0xff]  }
 0x55f   : > { %2095 = vmatmul.mubr.msk.bf16.vlgmr.msra.gmra.mrb[8].mxu1 %vm1067_vm4, %v1158_v37 }
 0x560   : > { %2108 = vmatprep.mubr.msk.bf16.mxu1 %vm2396_vm2, %v2395_v17  ;;  %2105 = vmatpush3.bf16.msra.mxu1 %v2239_v55 }
 0x561   : > { %2106 = vmatprep.subr.bf16.mxu1 %v2395_v17 }
 0x564   : > { %2107 = vmatpush3.bf16.msra.mxu1 %v2240_v0 }
 0x565   : > { %2120 = vmatprep.subr.bf16.mxu1 %v2395_v17 }
 0x584   : > { %v1139_v38 = vpop.xlane.xlu1 %1138 }
 0x585   : > { %2285 = vrcp.f32 %v1139_v38 }
 0x588   : > { %v1302_v39 = vpop.permute.xlu1 %1301 }
 0x589   : > { %2099 = vmatpush3.bf16.msra.mxu0 %v1302_v39 }
 0x58a   : > { %2112 = vmatprep.subr.bf16.mxu0 %v2395_v17 }
 0x58f   : > { %v2286_v41 = vpop.eup %2285 }
 0x590   : > { %v1155_v43 = vmul.f32 %v2286_v41, %v2270_v14  ;;  %v2242_v41 = vld [vmem:[%s2611_s21 + $0x8] sm:$0xff]  }
 0x592   : > { %v1159_v44 = vpack.c.bf16 %v1155_v43, %v1153_v42  ;;  %v2243_v42 = vld [vmem:[%s2625_s8] sm:$0xff]   ;;  %v2244_v43 = vld [vmem:[%s2625_s8 + $0x8] sm:$0xff]  }
 0x594   : > { %2101 = vmatmul.mubr.msk.bf16.vlgmr.msra.gmra.mrb[20].mxu0 %vm1067_vm4, %v1159_v44 }
 0x595   : > { %2116 = vmatprep.mubr.msk.bf16.mxu0 %vm2396_vm2, %v2395_v17  ;;  %2113 = vmatpush3.bf16.msra.mxu0 %v2241_v40 }
 0x596   : > { %2114 = vmatprep.subr.bf16.mxu0 %v2395_v17 }
 0x599   : > { %2115 = vmatpush3.bf16.msra.mxu0 %v2242_v41 }
 0x62a   : > { %v1200_v46 = vpop.f32.mrb[4].mxu1  ;;  %v1247_v50 = vpop.f32.mrb[16].mxu0 }
 0x62b   : > { %v2084_v51 = vpop.f32.mrb[5].mxu1  ;;  %v2090_v52 = vpop.f32.mrb[17].mxu0 }
 0x62c   : > { %v1203_v53 = vpop.f32.mrb[6].mxu1  ;;  %v1250_v54 = vpop.f32.mrb[18].mxu0 }
 0x62d   : > { %v2222_v56 = vpack.i.bf16 %v1250_v54, %v1247_v50  ;;  %v2085_v57 = vpop.f32.mrb[7].mxu1  ;;  %v2091_v58 = vpop.f32.mrb[19].mxu0 }
 0x62f   : > { %2223 = vrot.lane.b32.xlu0 %v2222_v56, %s2402_s25  ;;  %v1984_v56 = vld [vmem:[%s2992_s30] ss:$0 sm:$0xff] }
 0x632   : > { %v1294_v59 = vpop.f32.mrb[8].mxu1 }
 0x633   : > { %v2096_v60 = vpop.f32.mrb[9].mxu1 }
 0x634   : > { %v1297_v61 = vpop.f32.mrb[10].mxu1  ;;  %v1985_v60 = vld [vmem:[%s707_s28] ss:$0 sm:$0xff] }
 0x635   : > { %v2227_v62 = vpack.i.bf16 %v1297_v61, %v1294_v59  ;;  %v2097_v63 = vpop.f32.mrb[11].mxu1 }
 0x637   : > { %2228 = vrot.lane.b32.xlu1 %v2227_v62, %s2403_s26 }
 0x667   : > { %v1341_v1 = vpop.f32.mrb[20].mxu0 }
 0x668   : > { %v2102_v4 = vpop.f32.mrb[21].mxu0 }
 0x669   : > { %v1344_v5 = vpop.f32.mrb[22].mxu0  ;;  %v2246_v4 = vld [vmem:[%s2625_s8 + $0x18] sm:$0xff]  }
 0x66a   : > { %v2232_v6 = vpack.i.bf16 %v1344_v5, %v1341_v1  ;;  %v2103_v7 = vpop.f32.mrb[23].mxu0  ;;  %v2245_v1 = vld [vmem:[%s2625_s8 + $0x10] sm:$0xff]   ;;  %v2247_v5 = vld [vmem:[%s2625_s8 + $0x20] sm:$0xff]  }
 0x66b   : > { %v2249_v7 = vld [vmem:[%s2625_s8 + $0x30] sm:$0xff]  }
 0x66c   : > { %2233 = vrot.lane.b32.xlu0 %v2232_v6, %s2404_s0  ;;  %v2248_v6 = vld [vmem:[%s2625_s8 + $0x28] sm:$0xff]  }
 0x6a1   : > { %v2224_v8 = vpop.permute.xlu0 %2223 }
 0x6a2   : > { %v2226_v10 = vunpack.i.h.bf16 %v2224_v8  ;;  %v2225_v11 = vunpack.i.l.bf16 %v2224_v8  ;;  %v2250_v8 = vld [vmem:[%s2625_s8 + $0x38] sm:$0xff]  }
 0x6a4   : > { %v1373_v15 = vsel %vm872_vm3, %v1203_v53, %v2226_v10  ;;  %v1372_v16 = vsel %vm872_vm3, %v1200_v46, %v2225_v11 }
 0x6a9   : > { %v2229_v9 = vpop.permute.xlu1 %2228 }
 0x6aa   : > { %v2231_v12 = vunpack.i.h.bf16 %v2229_v9  ;;  %v2230_v13 = vunpack.i.l.bf16 %v2229_v9  ;;  %v1986_v9 = vld [vmem:[%s715_s12] ss:$0 sm:$0xff] }
 0x6ac   : > { %v1374_v47 = vsel %vm1067_vm4, %v1372_v16, %v2230_v13  ;;  %v1375_v45 = vsel %vm1067_vm4, %v1373_v15, %v2231_v12 }
 0x6de   : > { %v2234_v14 = vpop.permute.xlu0 %2233 }
 0x6df   : > { %v2236_v18 = vunpack.i.h.bf16 %v2234_v14  ;;  %v2235_v19 = vunpack.i.l.bf16 %v2234_v14 }
 0x6e1   : > { %v1378_v48 = vsel %vm1376_vm5, %v1375_v45, %v2236_v18  ;;  %v1377_v20 = vsel %vm1376_vm5, %v1374_v47, %v2235_v19 }
 0x6e2   : > { %v1379_v21 = vpack.c.bf16 %v1378_v48, %v1377_v20 }
 0x6e4   : > { %2109 = vmatmul.mubr.msk.bf16.vlgmr.msra.gmra.mrb[12].mxu1 %vm738_vm1, %v1379_v21 }
 0x6e5   : > { %2136 = vmatprep.mubr.msk.bf16.mxu1 %vm2396_vm2, %v2395_v17  ;;  %2121 = vmatpush3.bf16.msra.mxu1 %v2243_v42 }
 0x6e6   : > { %2122 = vmatprep.subr.bf16.mxu1 %v2395_v17 }
 0x6e9   : > { %2123 = vmatpush3.bf16.msra.mxu1 %v2244_v43 }
 0x6ea   : > { %2124 = vmatprep.subr.bf16.mxu1 %v2395_v17 }
 0x6ed   : > { %2125 = vmatpush3.bf16.msra.mxu1 %v2245_v1 }
 0x6ee   : > { %2126 = vmatprep.subr.bf16.mxu1 %v2395_v17 }
 0x6f1   : > { %2127 = vmatpush3.bf16.msra.mxu1 %v2246_v4 }
 0x6f2   : > { %2128 = vmatprep.subr.bf16.mxu1 %v2395_v17 }
 0x6f5   : > { %2129 = vmatpush3.bf16.msra.mxu1 %v2247_v5 }
 0x6f6   : > { %2130 = vmatprep.subr.bf16.mxu1 %v2395_v17 }
 0x6f9   : > { %2131 = vmatpush3.bf16.msra.mxu1 %v2248_v6 }
 0x6fa   : > { %2132 = vmatprep.subr.bf16.mxu1 %v2395_v17 }
 0x6fd   : > { %2133 = vmatpush3.bf16.msra.mxu1 %v2249_v7 }
 0x6fe   : > { %2134 = vmatprep.subr.bf16.mxu1 %v2395_v17 }
 0x701   : > { %2135 = vmatpush3.bf16.msra.mxu1 %v2250_v8 }
 0x7b7   : > { %v1440_v23 = vpop.f32.mrb[12].mxu1 }
 0x7b8   : > { %v1441_v24 = vadd.f32 %v1980_v22, %v1440_v23  ;;  %v2110_v49 = vpop.f32.mrb[13].mxu1 }
 0x7b9   : > { %v1443_v25 = vpop.f32.mrb[14].mxu1 }
 0x7ba   : > { %v2785_v26 = vadd.f32 %v1441_v24, %v2633_v2  ;;  %v1444_v27 = vadd.f32 %v1980_v22, %v1443_v25  ;;  %v2111_v28 = vpop.f32.mrb[15].mxu1  ;;  %v1990_v24 = vld [vmem:[%s723_s16] ss:$0 sm:$0xff] }
 0x7bc   : > { %v2788_v29 = vadd.f32 %v1444_v27, %v2636_v3  ;;  %v1451_v30 = vsel %vm738_vm1, %v2785_v26, 0.0 }
 0x7bd   : > { %1452 = vadd.xlane.f32.xlu1 %v1451_v30 }
 0x7be   : > { %v1454_v31 = vsel %vm738_vm1, %v2788_v29, 0.0 }
 0x7bf   : > { %1455 = vadd.xlane.f32.xlu0 %v1454_v31 }
 0x84a   : > { %v1453_v32 = vpop.xlane.xlu1 %1452 }
 0x84b   : > { %v1457_v33 = vmul.f32 0.03125, %v1453_v32 }
 0x84c   : > { %v1456_v2 = vpop.xlane.xlu0 %1455 }
 0x84d   : > { %v1459_v34 = vsub.f32 %v2785_v26, %v1457_v33  ;;  %v1458_v35 = vmul.f32 0.03125, %v1456_v2 }
 0x84f   : > { %v1460_v3 = vsub.f32 %v2788_v29, %v1458_v35  ;;  %v1461_v36 = vmul.f32 %v1459_v34, %v1459_v34 }
 0x851   : > { %v1463_v37 = vsel %vm738_vm1, %v1461_v36, 0.0  ;;  %v1462_v38 = vmul.f32 %v1460_v3, %v1460_v3 }
 0x852   : > { %1464 = vadd.xlane.f32.xlu0 %v1463_v37 }
 0x853   : > { %v1466_v39 = vsel %vm738_vm1, %v1462_v38, 0.0 }
 0x856   : > { %1467 = vadd.xlane.f32.xlu0 %v1466_v39 }
 0x8df   : > { %v1465_v44 = vpop.xlane.xlu0 %1464 }
 0x8e0   : > { %v1469_v46 = vmul.f32 0.03125, %v1465_v44 }
 0x8e2   : > { %v1471_v50 = vadd.f32 1e-06, %v1469_v46 }
 0x8e3   : > { %v1468_v51 = vpop.xlane.xlu0 %1467 }
 0x8e4   : > { %2287 = vrsqrt.f32 %v1471_v50  ;;  %v1470_v52 = vmul.f32 0.03125, %v1468_v51 }
 0x8e6   : > { %v1472_v53 = vadd.f32 1e-06, %v1470_v52 }
 0x8e8   : > { %2289 = vrsqrt.f32 %v1472_v53 }
 0x8ee   : > { %v2288_v54 = vpop.eup %2287 }
 0x8ef   : > { %v1475_v55 = vmul.f32 %v2288_v54, %v1459_v34 }
 0x8f1   : > { %v1483_v58 = vmul.f32 %v1984_v56, %v1475_v55 }
 0x8f2   : > { %v2290_v57 = vpop.eup %2289 }
 0x8f3   : > { %v1476_v59 = vmul.f32 %v2290_v57, %v1460_v3  ;;  %v1491_v62 = vadd.f32 %v1985_v60, %v1483_v58 }
 0x8f5   : > { %v1484_v61 = vmul.f32 %v1984_v56, %v1476_v59 }
 0x8f7   : > { %v1492_v63 = vadd.f32 %v1985_v60, %v1484_v61 }
 0x8f9   : > { %v1493_v0 = vpack.c.bf16 %v1492_v63, %v1491_v62 }
 0x8fb   : > { %2117 = vmatmul.mubr.msk.bf16.vlgmr.msra.gmra.mrb[24].mxu0 %vm738_vm1, %v1493_v0 }
 0x9ce   : > { %v1554_v10 = vpop.f32.mrb[24].mxu0 }
 0x9cf   : > { %v1555_v11 = vadd.f32 %v1986_v9, %v1554_v10  ;;  %v2118_v12 = vpop.f32.mrb[25].mxu0 }
 0x9d0   : > { %v1557_v13 = vpop.f32.mrb[26].mxu0 }
 0x9d1   : > { %v1563_v14 = vmul.f32 0.70710677, %v1555_v11  ;;  %v1558_v15 = vadd.f32 %v1986_v9, %v1557_v13  ;;  %v2119_v16 = vpop.f32.mrb[27].mxu0  ;;  %v1561_v45 = vmul.f32 0.5, %v1555_v11 }
 0x9d3   : > { %2291 = verf.f32 %v1563_v14  ;;  %v1564_v18 = vmul.f32 0.70710677, %v1558_v15  ;;  %v1562_v48 = vmul.f32 0.5, %v1558_v15 }
 0x9d5   : > { %2293 = verf.f32 %v1564_v18 }
 0x9dd   : > { %v2292_v19 = vpop.eup %2291 }
 0x9de   : > { %v1567_v17 = vadd.f32 1.0, %v2292_v19 }
 0x9df   : > { %v2294_v47 = vpop.eup %2293 }
 0x9e0   : > { %v1568_v20 = vadd.f32 1.0, %v2294_v47  ;;  %v1569_v21 = vmul.f32 %v1567_v17, %v1561_v45 }
 0x9e2   : > { %v1570_v22 = vmul.f32 %v1568_v20, %v1562_v48 }
 0x9e4   : > { %v1571_v23 = vpack.c.bf16 %v1570_v22, %v1569_v21 }
 0x9e6   : > { %2137 = vmatmul.mubr.bf16.vlgmr.msra.gmra.mrb[16].mxu1 %v1571_v23 }
 0xab8   : > { %1689 = sbr.rel (%p1999_p1) target bundleno = 2753 (0xac1), region = 92 }
 0xab9   : > { %v1677_v49 = vpop.f32.mrb[16].mxu1 }
 0xaba   : > { %v1678_v25 = vadd.f32 %v1990_v24, %v1677_v49  ;;  %v2138_v27 = vpop.f32.mrb[17].mxu1 }
 0xabb   : > { %v1680_v28 = vpop.f32.mrb[18].mxu1 }
 0xabc   : > { %v1684_v30 = vadd.f32 %v1678_v25, %v2785_v26  ;;  %v1681_v31 = vadd.f32 %v1990_v24, %v1680_v28  ;;  %v2139_v32 = vpop.f32.mrb[19].mxu1 }
 0xabe   : > { %v1685_v33 = vadd.f32 %v1681_v31, %v2788_v29  ;;  %1690 = vst.msk [vmem:[%s2627_s14] sm:$0xff] (!%p1999_p1), %vm738_vm1, %v1684_v30 }
 0xac0   : > { %1691 = vst.msk [vmem:[%s2627_s14 + $0x8] sm:$0xff] %vm738_vm1, %v1685_v33 }
 0xac1 PF: > { %s2994_s19 = sld [smem:[#allocation8_spill]] }
 0xac7   : > { %p2000_p2 = scmp.ne.s32.totalorder %s2994_s19, 1 }
 0xac8   : > { %v1698_v2 = vsel (!%p2000_p2), %vm738_vm1, %v1684_v30, 0.0  ;;  %v1701_v26 = vsel (!%p2000_p2), %vm738_vm1, %v1685_v33, 0.0  ;;  %s2995_s22 = sld [smem:[#allocation24_spill]] (!%p2000_p2)  ;;  %s2996_s20 = sld [smem:[#allocation25_spill]] (!%p2000_p2) }
 0xac9   : > { %1695 = sbr.rel (%p2000_p2) target bundleno = 3078 (0xc06), region = 96  ;;  %1699 = vadd.xlane.f32.xlu0 (!%p2000_p2), %v1698_v2 }
 0xacd   : > { %1702 = vadd.xlane.f32.xlu0 (!%p2000_p2), %v1701_v26 }
 0xace   : > { %v2001_v53 = vld [vmem:[%s2995_s22] ss:$0 sm:$0xff] (!%p2000_p2) }
 0xacf   : > { %v2002_v55 = vld [vmem:[%s2996_s20] ss:$0 sm:$0xff] (!%p2000_p2) }
 0xb56   : > { %v1700_v29 = vpop.xlane.xlu0 %1699 }
 0xb57   : > { %v1704_v34 = vmul.f32 0.03125, %v1700_v29 }
 0xb59   : > { %v1706_v35 = vsub.f32 %v1684_v30, %v1704_v34 }
 0xb5a   : > { %v1703_v3 = vpop.xlane.xlu0 %1702 }
 0xb5b   : > { %v1705_v36 = vmul.f32 0.03125, %v1703_v3  ;;  %v1708_v37 = vmul.f32 %v1706_v35, %v1706_v35 }
 0xb5d   : > { %v1707_v38 = vsub.f32 %v1685_v33, %v1705_v36  ;;  %v1710_v39 = vsel %vm738_vm1, %v1708_v37, 0.0 }
 0xb5e   : > { %1711 = vadd.xlane.f32.xlu1 %v1710_v39 }
 0xb5f   : > { %v1709_v40 = vmul.f32 %v1707_v38, %v1707_v38 }
 0xb61   : > { %v1713_v41 = vsel %vm738_vm1, %v1709_v40, 0.0 }
 0xb62   : > { %1714 = vadd.xlane.f32.xlu1 %v1713_v41 }
 0xbeb   : > { %v1712_v42 = vpop.xlane.xlu1 %1711 }
 0xbec   : > { %v1716_v43 = vmul.f32 0.03125, %v1712_v42 }
 0xbee   : > { %v1718_v44 = vadd.f32 1e-06, %v1716_v43 }
 0xbef   : > { %v1715_v46 = vpop.xlane.xlu1 %1714 }
 0xbf0   : > { %2295 = vrsqrt.f32 %v1718_v44  ;;  %v1717_v50 = vmul.f32 0.03125, %v1715_v46 }
 0xbf2   : > { %v1719_v51 = vadd.f32 1e-06, %v1717_v50 }
 0xbf4   : > { %2297 = vrsqrt.f32 %v1719_v51 }
 0xbfa   : > { %v2296_v52 = vpop.eup %2295 }
 0xbfb   : > { %v1722_v54 = vmul.f32 %v2296_v52, %v1706_v35 }
 0xbfd   : > { %v1730_v56 = vmul.f32 %v2001_v53, %v1722_v54 }
 0xbfe   : > { %v2298_v57 = vpop.eup %2297 }
 0xbff   : > { %v1738_v58 = vadd.f32 %v2002_v55, %v1730_v56  ;;  %v1723_v59 = vmul.f32 %v2298_v57, %v1707_v38 }
 0xc01   : > { %1740 = vst.msk [vmem:[%s2627_s14] sm:$0xff] %vm738_vm1, %v1738_v58  ;;  %v1731_v60 = vmul.f32 %v2001_v53, %v1723_v59 }
 0xc03   : > { %v1739_v61 = vadd.f32 %v2002_v55, %v1731_v60 }
 0xc05   : > { %1741 = vst.msk [vmem:[%s2627_s14 + $0x8] sm:$0xff] %vm738_vm1, %v1739_v61 }
 0xc06 PF: > { %s2997_s24 = sld [smem:[#allocation9_spill]]  ;;  %s2998_s17 = sld [smem:[#allocation6_spill]] }
 0xc07   : > { %s3000_s18 = sld [smem:[#allocation26_spill]]  ;;  %s1756_s28 = sshll.u32 %s2627_s14, 4  ;;  %s2866_s28 = int_to_ptr.vmem [resolvable:$true] %s1756_s28 }
 0xc08   : > { %s2299_s12 = scalar_lea.vmem %s2866_s28, 256  ;;  %s2405_s4 = smov [#allocation2]  }
 0xc09   : > { %p2300_p4 = scmp.ne.s32.totalorder %s2866_s28, %s2299_s12  ;;  %s2303_s19 = sshll.u32 %s2405_s4, 4  ;;  %s2304_s19 = int_to_ptr.vmem [resolvable:$false] %s2303_s19 }
 0xc0a   : > { %s2305_s16 = scalar_lea.vmem %s2304_s19, 512  ;;  %p2306_p7 = scmp.lt.s32.totalorder %s2866_s28, %s2304_s19 }
 0xc0b   : > { %p2301_p5 = pnand %p2300_p4, %p2541_p3  ;;  %p2307_p8 = scmp.lt.s32.totalorder %s2305_s16, %s2299_s12 }
 0xc0c   : > { %s2013_s27 = sshll.u32 %s2997_s24, 8  ;;  %s3001_s15 = sand.u32 1, %s2998_s17  }
 0xc0d   : > { %s2863_s29 = scalar_lea.hbm %s3000_s18, %s2013_s27  ;;  %s2870_s8 = scalar_lea.sflag [#allocation3], %s3001_s15 }
 0xc0e   : > { %p2302_p6 = pneg %p2301_p5  ;;  %p2308_p10 = por %p2307_p8, %p2306_p7 }
 0xc10   : > { %p2309_p11 = pnand %p2308_p10, %p2302_p6 }
 0xc12   : > { %2312 = shalt.err (!%p2309_p11)
}
 0xc13   : > { %s2313_s14 = scalar_lea.hbm %s2863_s29, 256  ;;  %s2317_s26 = scalar_lea.hbm %s3000_s18, 512 }
 0xc14   : > { %p2314_p12 = scmp.ne.s32.totalorder %s2863_s29, %s2313_s14  ;;  %p2318_p1 = scmp.lt.u32.totalorder %s2863_s29, %s3000_s18 }
 0xc15   : > { %p2319_p2 = scmp.lt.u32.totalorder %s2317_s26, %s2313_s14  ;;  %p2321_p5 = scmp.lt.u32.totalorder %s2313_s14, %s2863_s29 }
 0xc16   : > { %p2315_p13 = pnand %p2314_p12, %p2541_p3 }
 0xc17   : > { %p2320_p4 = por %p2319_p2, %p2318_p1 }
 0xc18   : > { %p2316_p0 = pneg %p2315_p13 }
 0xc19   : > { %p2322_p6 = por %p2321_p5, %p2320_p4 }
 0xc1b   : > { %p2323_p7 = pnand %p2322_p6, %p2316_p0 }
 0xc1d   : > { %2326 = shalt.err (!%p2323_p7)
}
 0xc1e   : > { %s2406_s24 = smov 128  }
 0xc1f   : > { %2140 = dma.vmem_to_hbm [thread:$0]  (%p2541_p3), %s2866_s28, 256, %s2863_s29, %s2870_s8, %s2406_s24, %s2406_s24, %s2402_s25  }
 0xc20 PF: > { %s3002_s17 = sld [smem:[#allocation12_spill]]  ;;  %s3003_s27 = sld [smem:[#allocation5_spill]] }
 0xc26   : > { %p2146_p8 = scmp.ge.s32.totalorder %s3002_s17, 2  ;;  %s1771_s30 = sand.u32 1, %s3003_s27  }
 0xc27   : > { %s1772_s15 = scalar_lea.sflag [#allocation3], %s1771_s30 }
 0xc28   : > { %p2143_p10 = pnand %p2146_p8, %p2551_p9 }
 0xc2a   : > { %2360 = dma.done.wait (!%p2143_p10), %s1772_s15, 256  }
 0xc2b   : > { %2362 = vsyncadd (!%p2143_p10), %s1772_s15, 4294967040  ;;  %s29_s28 = sadd.s32 1, %s3002_s17   ;;  %s3005_s21 = sld [smem:[#allocation6_spill]] }
 0xc2c   : > { %p26_p11 = scmp.ge.s32.totalorder %s29_s28, 6   ;;  %s3006_s22 = sld [smem:[#allocation7_spill]] }
 0xc2d   : > { %s3007_s23 = sld [smem:[#allocation17_spill]]  ;;  %s3008_s24 = sld [smem:[#allocation10_spill]] }
 0xc2e   : > { %s3009_s25 = sld [smem:[#allocation11_spill]]  ;;  %s3010_s26 = sld [smem:[#allocation13_spill]] }
 0xc2f   : > { %s3011_s27 = sld [smem:[#allocation15_spill]]  ;;  %28 = sbr.rel (!%p26_p11) target bundleno = 15 (0xf), region = 167 }
 0xc36   :  { %1777 = vsyncpa [#allocation3], 1 }
 0xc37   :  { %1779 = vsyncpa [#allocation3 + $0x1], 1 }

</bundles_post_ra>
